<compile_context>
chip_gen: v7x
topology: tpu7x:2x2x1
jax: 0.10.0
libtpu: 0.0.40
codegen_flags: <defaults>
</compile_context>

<pallas_src>
import jax
import jax.numpy as jnp
from jax.experimental import pallas as pl
from jax.experimental.pallas import tpu as pltpu
from jax.scipy.linalg import block_diag

INDEX_RANGES = {
    "numerical": (0, 6),
    "cat_set_1": (6, 10),
    "cat_set_2": (10, 14),
    "cat_set_3": (14, 20),
}
FEAT_DIM = 20
NUM_CLASSES = 26
NUMERIC_OUT, CAT1_OUT, CAT2_OUT, CAT3_OUT, SYNERGY_OUT = 8, 2, 4, 4, 8
NUMERIC_H, CAT_H, SYN_H = 32, 16, 32
HIDDEN_DIM = 128
ROW_EMB_DIM = NUMERIC_OUT + CAT1_OUT + CAT2_OUT + CAT3_OUT   # 18
FINAL_IN = 8 * ROW_EMB_DIM + SYNERGY_OUT                     # 152
PARTY_FLAT = 8 * FEAT_DIM                                    # 160
ROW_H = NUMERIC_H + 3 * CAT_H                                # 80 (per-row L1 width)
EMB_H = 8 * ROW_H + SYN_H                                    # 672 (block-diag L1 width)
OUT_PAD = 128                                                # lane-dense logits block


def _round_up(x, m):
    return (x + m - 1) // m * m


def _cdiv(a, b):
    return -(-a // b)


# ----------------------------------------------------------------------------
# Kernel: 5 MXU dots over one (TB, ...) batch tile (L1 is split party/synergy).
# ----------------------------------------------------------------------------
def policy_kernel(party_ref, syn_ref,        # (TB,160) / (TB,26)   compute dtype
                  w1p_ref, w1s_ref, b1_ref,  # (160,672)/(26,672)/(1,672) block-diag L1
                  w2_ref, b2_ref,            # (672,152)/(1,152)          block-diag L2
                  f1w_ref, f1b_ref,          # (152,128)/(1,128)          fc1
                  f2w_ref, f2b_ref,          # (128,128)/(1,128)          fc2 (lane-padded)
                  out_ref):                  # (TB,128)
    cdt = w1p_ref.dtype

    # Embedder layer 1 (all 5 MLPs' first Linears, block diagonal) + ReLU.
    # Split by input rows: party features hit the first 640 output cols,
    # synergy features the last 32; off-diagonal blocks are zero, so the sum
    # equals the single block-diagonal dot on the concatenated input.
    h = jnp.dot(party_ref[...], w1p_ref[...], preferred_element_type=jnp.float32)
    h = h + jnp.dot(syn_ref[...], w1s_ref[...], preferred_element_type=jnp.float32)
    h = jnp.maximum(h + b1_ref[...], 0.0).astype(cdt)

    # Embedder layer 2 + ReLU -> (TB, 152) == [row0..row7 emb (18 each) | syn emb (8)],
    # exactly the torch concat order feeding fc1.
    emb = jnp.maximum(
        jnp.dot(h, w2_ref[...], preferred_element_type=jnp.float32) + b2_ref[...],
        0.0).astype(cdt)

    # fc1 + ReLU (layer_norm=False in the reference module).
    hidden = jnp.maximum(
        jnp.dot(emb, f1w_ref[...], preferred_element_type=jnp.float32) + f1b_ref[...],
        0.0).astype(cdt)

    # fc2 (output columns >= 27 are zero-padded weights -> zero logits).
    out_ref[...] = (
        jnp.dot(hidden, f2w_ref[...], preferred_element_type=jnp.float32)
        + f2b_ref[...]).astype(out_ref.dtype)


# ----------------------------------------------------------------------------
# One-time wrapper-side weight packing (hoisted out of the forward; cache the
# result and reuse it across calls — only re-pack when the parameters change).
# ----------------------------------------------------------------------------
def pack_params(params, compute_dtype=jnp.bfloat16):
    (nw1, nb1, nw2, nb2, c1w1, c1b1, c1w2, c1b2,
     c2w1, c2b1, c2w2, c2b2, c3w1, c3b1, c3w2, c3b2,
     sw1, sb1, sw2, sb2, f1w, f1b, f2w, f2b) = params

    # Per-party-row block-diagonal first/second layers: (20,80) and (80,18).
    w1_row = block_diag(nw1, c1w1, c2w1, c3w1)
    b1_row = jnp.concatenate([nb1, c1b1, c2b1, c3b1], axis=1)
    w2_row = block_diag(nw2, c1w2, c2w2, c3w2)
    b2_row = jnp.concatenate([nb2, c1b2, c2b2, c3b2], axis=1)

    # Full block-diagonal over [8 party rows | synergy]: (186,672) and (672,152),
    # then split layer-1 rows into the party (160) and synergy (26) halves so
    # the kernel can consume the two inputs without a wrapper concat.
    w1_all = block_diag(*([w1_row] * 8 + [sw1]))
    w1_party, w1_syn = w1_all[:PARTY_FLAT, :], w1_all[PARTY_FLAT:, :]
    b1_all = jnp.concatenate([jnp.tile(b1_row, (1, 8)), sb1], axis=1)
    w2_all = block_diag(*([w2_row] * 8 + [sw2]))
    b2_all = jnp.concatenate([jnp.tile(b2_row, (1, 8)), sb2], axis=1)

    # Lane-dense output: pad fc2 to 128 output columns (sliced back outside).
    f2w_pad = jnp.zeros((HIDDEN_DIM, OUT_PAD), f2w.dtype).at[:, :NUM_CLASSES + 1].set(f2w)
    f2b_pad = jnp.zeros((1, OUT_PAD), f2b.dtype).at[:, :NUM_CLASSES + 1].set(f2b)

    cast = lambda w: w.astype(compute_dtype)
    # Weights in compute dtype (bf16 streaming / single-pass MXU); biases stay f32.
    return (cast(w1_party), cast(w1_syn), b1_all.astype(jnp.float32),
            cast(w2_all), b2_all.astype(jnp.float32),
            cast(f1w), f1b.astype(jnp.float32),
            cast(f2w_pad), f2b_pad.astype(jnp.float32))


def _choose_tiling(B, *, tile_cap=1024, min_steps=2):
    """>=2 grid steps (v7x dual-TC + DMA hiding), <=tile_cap rows, tight padding."""
    steps = max(min_steps, _cdiv(max(B, 1), tile_cap))
    tb = _round_up(_cdiv(max(B, 1), steps), 8)
    return tb, steps * tb


def _vmem_limit_bytes(tb, compute_dtype):
    """Estimate the scoped-VMEM footprint (2x margin, 16 MiB floor, 64 MiB cap)."""
    cb = jnp.dtype(compute_dtype).itemsize
    syn_lanes = _round_up(NUM_CLASSES, 128)
    ins = 2 * tb * (PARTY_FLAT + syn_lanes) * cb                  # inputs, double-buffered
    outs = 2 * tb * OUT_PAD * 4                                   # output, double-buffered
    wts = 2 * ((PARTY_FLAT * EMB_H + _round_up(NUM_CLASSES, 8) * EMB_H
                + EMB_H * FINAL_IN + _round_up(FINAL_IN, 8) * HIDDEN_DIM
                + HIDDEN_DIM * OUT_PAD) * cb
               + (EMB_H + FINAL_IN + HIDDEN_DIM + OUT_PAD) * 4)   # weights + f32 biases
    tmp = tb * (EMB_H + FINAL_IN + HIDDEN_DIM) * (4 + cb) + tb * OUT_PAD * 4
    est = ins + outs + wts + tmp
    return int(min(max(2 * est, 16 * 1024 * 1024), 64 * 1024 * 1024))


def policy_forward(party, synergy, packed, *,
                   compute_dtype=jnp.bfloat16, out_dtype=jnp.float32,
                   tile_cap=1024):
    """Forward pass. `packed` is the (cached) output of pack_params()."""
    B = party.shape[0]

    # Flat party rows (free reshape) and synergy as two separate lane-dense inputs.
    party_flat = party.reshape(B, PARTY_FLAT).astype(compute_dtype)
    syn = synergy.astype(compute_dtype)

    TB, Bp = _choose_tiling(B, tile_cap=tile_cap)
    if Bp != B:
        party_flat = jnp.pad(party_flat, ((0, Bp - B), (0, 0)))
        syn = jnp.pad(syn, ((0, Bp - B), (0, 0)))

    party_spec = pl.BlockSpec((TB, PARTY_FLAT), lambda i: (i, 0))
    syn_spec = pl.BlockSpec((TB, NUM_CLASSES), lambda i: (i, 0))
    out_spec = pl.BlockSpec((TB, OUT_PAD), lambda i: (i, 0))
    # Weights: full-array blocks with constant index_maps -> stay resident in VMEM.
    # (pipeline_mode=pl.Buffered(1) would halve their double-buffer footprint; the
    #  ~1 MiB saved is irrelevant here, so we keep the default for compile safety.)
    w_specs = [pl.BlockSpec(p.shape, lambda i: (0, 0)) for p in packed]

    out = pl.pallas_call(
        policy_kernel,
        out_shape=jax.ShapeDtypeStruct((Bp, OUT_PAD), out_dtype),
        grid=(Bp // TB,),
        in_specs=[party_spec, syn_spec] + w_specs,
        out_specs=out_spec,
        compiler_params=pltpu.CompilerParams(
            dimension_semantics=("parallel",),                   # megacore / v7x dual-TC
            vmem_limit_bytes=_vmem_limit_bytes(TB, compute_dtype)),
    )(party_flat, syn, *packed)

    return out[:B, :NUM_CLASSES + 1]


# ----------------------------------------------------------------------------
# PyTorch-style init + pure-JAX reference (for verification).
# ----------------------------------------------------------------------------
def init_params(key):
    """Deterministic PyTorch-style (uniform +-1/sqrt(fan_in)) initialization."""
    def linear(k, fan_in, fan_out):
        kw, kb = jax.random.split(k)
        bound = 1.0 / (fan_in ** 0.5)
        w = jax.random.uniform(kw, (fan_in, fan_out), jnp.float32, -bound, bound)
        b = jax.random.uniform(kb, (1, fan_out), jnp.float32, -bound, bound)
        return w, b

    keys = jax.random.split(key, 12)
    params = []
    mlp_specs = [  # (in_dim, out_dim, hidden_dim)
        (6, NUMERIC_OUT, NUMERIC_H),
        (4, CAT1_OUT, CAT_H),
        (4, CAT2_OUT, CAT_H),
        (6, CAT3_OUT, CAT_H),
        (NUM_CLASSES, SYNERGY_OUT, SYN_H),
    ]
    ki = 0
    for fi, fo, hid in mlp_specs:
        w1, b1 = linear(keys[ki], fi, hid); ki += 1
        w2, b2 = linear(keys[ki], hid, fo); ki += 1
        params += [w1, b1, w2, b2]
    f1w, f1b = linear(keys[ki], FINAL_IN, HIDDEN_DIM); ki += 1
    f2w, f2b = linear(keys[ki], HIDDEN_DIM, NUM_CLASSES + 1)
    params += [f1w, f1b, f2w, f2b]
    return params


def reference_forward(party, synergy, params):
    """Pure-JAX mirror of the torch forward (for verification)."""
    (nw1, nb1, nw2, nb2, c1w1, c1b1, c1w2, c1b2,
     c2w1, c2b1, c2w2, c2b2, c3w1, c3b1, c3w2, c3b2,
     sw1, sb1, sw2, sb2, f1w, f1b, f2w, f2b) = params

    def mlp(x, w1, b1, w2, b2):
        return jnp.maximum(jnp.maximum(x @ w1 + b1, 0.0) @ w2 + b2, 0.0)

    rows = []
    for r in range(8):
        row = party[:, r, :].astype(jnp.float32)
        rows.append(jnp.concatenate([
            mlp(row[:, 0:6],   nw1, nb1, nw2, nb2),
            mlp(row[:, 6:10],  c1w1, c1b1, c1w2, c1b2),
            mlp(row[:, 10:14], c2w1, c2b1, c2w2, c2b2),
            mlp(row[:, 14:20], c3w1, c3b1, c3w2, c3b2),
        ], axis=1))
    party_emb = jnp.concatenate(rows, axis=1)                       # (B, 144)
    syn_emb = mlp(synergy.astype(jnp.float32), sw1, sb1, sw2, sb2)  # (B, 8)
    x = jnp.concatenate([party_emb, syn_emb], axis=1)               # (B, 152)
    x = jnp.maximum(x @ f1w + f1b, 0.0)
    return x @ f2w + f2b


if __name__ == "__main__":
    key = jax.random.PRNGKey(0)
    kp, ks, kw = jax.random.split(key, 3)

    B = 2
    party_tensor = jax.random.normal(kp, (B, 8, FEAT_DIM), jnp.float32)
    synergy_tensor = (jax.random.uniform(ks, (B, NUM_CLASSES)) < 0.3).astype(jnp.float32)
    params = init_params(kw)

    ref = reference_forward(party_tensor, synergy_tensor, params)

    # f32 compute path: must match the reference tightly (verifies the packing).
    packed_f32 = pack_params(params, compute_dtype=jnp.float32)
    logits_f32 = jax.block_until_ready(
        policy_forward(party_tensor, synergy_tensor, packed_f32,
                       compute_dtype=jnp.float32))
    assert logits_f32.shape == (B, NUM_CLASSES + 1), logits_f32.shape
    assert jnp.allclose(logits_f32, ref, atol=1e-4, rtol=1e-4), "f32 mismatch vs JAX reference"

    # Default bf16 streaming path (single-pass MXU): f32 accumulation, looser
    # tolerance from bf16 input/weight rounding.
    packed_bf16 = pack_params(params)                  # packed once, reused per call
    logits = jax.block_until_ready(
        policy_forward(party_tensor, synergy_tensor, packed_bf16))
    assert logits.shape == (B, NUM_CLASSES + 1), logits.shape
    assert jnp.allclose(logits, ref, atol=1e-1, rtol=1e-1), "bf16 mismatch vs reference"

    print("KERNEL_OK")
</pallas_src>

<mosaic_0001>
module attributes {stable_mosaic.version = 11 : i64} {
  func.func @policy_kernel(%arg0: i32, %arg1: memref<8x160xf32, #tpu.memory_space<vmem>>, %arg2: memref<8x26xf32, #tpu.memory_space<vmem>>, %arg3: memref<160x672xf32, #tpu.memory_space<vmem>>, %arg4: memref<26x672xf32, #tpu.memory_space<vmem>>, %arg5: memref<1x672xf32, #tpu.memory_space<vmem>>, %arg6: memref<672x152xf32, #tpu.memory_space<vmem>>, %arg7: memref<1x152xf32, #tpu.memory_space<vmem>>, %arg8: memref<152x128xf32, #tpu.memory_space<vmem>>, %arg9: memref<1x128xf32, #tpu.memory_space<vmem>>, %arg10: memref<128x128xf32, #tpu.memory_space<vmem>>, %arg11: memref<1x128xf32, #tpu.memory_space<vmem>>, %arg12: memref<8x128xf32, #tpu.memory_space<vmem>>) attributes {dimension_semantics = [#tpu.dimension_semantics<parallel>], iteration_bounds = array<i64: 2>, scalar_prefetch = 0 : i64, scratch_operands = 0 : i64, tpu.core_type = #tpu.core_type<tc>, window_params = [{transform_indices = @transform_0, window_bounds = array<i64: 8, 160>}, {transform_indices = @transform_1, window_bounds = array<i64: 8, 26>}, {pipeline_mode = #tpu.pipeline_mode<synchronous>, transform_indices = @transform_2, window_bounds = array<i64: 160, 672>}, {pipeline_mode = #tpu.pipeline_mode<synchronous>, transform_indices = @transform_3, window_bounds = array<i64: 26, 672>}, {pipeline_mode = #tpu.pipeline_mode<synchronous>, transform_indices = @transform_4, window_bounds = array<i64: 1, 672>}, {pipeline_mode = #tpu.pipeline_mode<synchronous>, transform_indices = @transform_5, window_bounds = array<i64: 672, 152>}, {pipeline_mode = #tpu.pipeline_mode<synchronous>, transform_indices = @transform_6, window_bounds = array<i64: 1, 152>}, {pipeline_mode = #tpu.pipeline_mode<synchronous>, transform_indices = @transform_7, window_bounds = array<i64: 152, 128>}, {pipeline_mode = #tpu.pipeline_mode<synchronous>, transform_indices = @transform_8, window_bounds = array<i64: 1, 128>}, {pipeline_mode = #tpu.pipeline_mode<synchronous>, transform_indices = @transform_9, window_bounds = array<i64: 128, 128>}, {pipeline_mode = #tpu.pipeline_mode<synchronous>, transform_indices = @transform_10, window_bounds = array<i64: 1, 128>}, {transform_indices = @transform_11, window_bounds = array<i64: 8, 128>}]} {
    %c0 = arith.constant 0 : index
    %c0_0 = arith.constant 0 : index
    %0 = vector.load %arg1[%c0, %c0_0] : memref<8x160xf32, #tpu.memory_space<vmem>>, vector<8x160xf32>
    %c0_1 = arith.constant 0 : index
    %c0_2 = arith.constant 0 : index
    %1 = vector.load %arg3[%c0_1, %c0_2] : memref<160x672xf32, #tpu.memory_space<vmem>>, vector<160x672xf32>
    %cst = arith.constant dense<0.000000e+00> : vector<8x672xf32>
    %2 = tpu.matmul %0, %1, %cst {dimension_numbers = #tpu.dot_dimension_numbers<[1], [0], [0], [1], [0, 0, 1, 1], [], []>} : vector<8x160xf32>, vector<160x672xf32>, vector<8x672xf32> -> vector<8x672xf32>
    %c0_3 = arith.constant 0 : index
    %c0_4 = arith.constant 0 : index
    %3 = vector.load %arg2[%c0_3, %c0_4] : memref<8x26xf32, #tpu.memory_space<vmem>>, vector<8x26xf32>
    %c0_5 = arith.constant 0 : index
    %c0_6 = arith.constant 0 : index
    %4 = vector.load %arg4[%c0_5, %c0_6] : memref<26x672xf32, #tpu.memory_space<vmem>>, vector<26x672xf32>
    %cst_7 = arith.constant dense<0.000000e+00> : vector<8x672xf32>
    %5 = tpu.matmul %3, %4, %cst_7 {dimension_numbers = #tpu.dot_dimension_numbers<[1], [0], [0], [1], [0, 0, 1, 1], [], []>} : vector<8x26xf32>, vector<26x672xf32>, vector<8x672xf32> -> vector<8x672xf32>
    %6 = arith.addf %2, %5 : vector<8x672xf32>
    %c0_8 = arith.constant 0 : index
    %c0_9 = arith.constant 0 : index
    %7 = vector.load %arg5[%c0_8, %c0_9] : memref<1x672xf32, #tpu.memory_space<vmem>>, vector<1x672xf32>
    %8 = vector.broadcast %7 : vector<1x672xf32> to vector<8x672xf32>
    %9 = arith.addf %6, %8 : vector<8x672xf32>
    %cst_10 = arith.constant 0.000000e+00 : f32
    %10 = vector.broadcast %cst_10 : f32 to vector<8x672xf32>
    %11 = arith.maximumf %9, %10 : vector<8x672xf32>
    %c0_11 = arith.constant 0 : index
    %c0_12 = arith.constant 0 : index
    %12 = vector.load %arg6[%c0_11, %c0_12] : memref<672x152xf32, #tpu.memory_space<vmem>>, vector<672x152xf32>
    %cst_13 = arith.constant dense<0.000000e+00> : vector<8x152xf32>
    %13 = tpu.matmul %11, %12, %cst_13 {dimension_numbers = #tpu.dot_dimension_numbers<[1], [0], [0], [1], [0, 0, 1, 1], [], []>} : vector<8x672xf32>, vector<672x152xf32>, vector<8x152xf32> -> vector<8x152xf32>
    %c0_14 = arith.constant 0 : index
    %c0_15 = arith.constant 0 : index
    %14 = vector.load %arg7[%c0_14, %c0_15] : memref<1x152xf32, #tpu.memory_space<vmem>>, vector<1x152xf32>
    %15 = vector.broadcast %14 : vector<1x152xf32> to vector<8x152xf32>
    %16 = arith.addf %13, %15 : vector<8x152xf32>
    %cst_16 = arith.constant 0.000000e+00 : f32
    %17 = vector.broadcast %cst_16 : f32 to vector<8x152xf32>
    %18 = arith.maximumf %16, %17 : vector<8x152xf32>
    %c0_17 = arith.constant 0 : index
    %c0_18 = arith.constant 0 : index
    %19 = vector.load %arg8[%c0_17, %c0_18] : memref<152x128xf32, #tpu.memory_space<vmem>>, vector<152x128xf32>
    %cst_19 = arith.constant dense<0.000000e+00> : vector<8x128xf32>
    %20 = tpu.matmul %18, %19, %cst_19 {dimension_numbers = #tpu.dot_dimension_numbers<[1], [0], [0], [1], [0, 0, 1, 1], [], []>} : vector<8x152xf32>, vector<152x128xf32>, vector<8x128xf32> -> vector<8x128xf32>
    %c0_20 = arith.constant 0 : index
    %c0_21 = arith.constant 0 : index
    %21 = vector.load %arg9[%c0_20, %c0_21] : memref<1x128xf32, #tpu.memory_space<vmem>>, vector<1x128xf32>
    %22 = vector.broadcast %21 : vector<1x128xf32> to vector<8x128xf32>
    %23 = arith.addf %20, %22 : vector<8x128xf32>
    %cst_22 = arith.constant 0.000000e+00 : f32
    %24 = vector.broadcast %cst_22 : f32 to vector<8x128xf32>
    %25 = arith.maximumf %23, %24 : vector<8x128xf32>
    %c0_23 = arith.constant 0 : index
    %c0_24 = arith.constant 0 : index
    %26 = vector.load %arg10[%c0_23, %c0_24] : memref<128x128xf32, #tpu.memory_space<vmem>>, vector<128x128xf32>
    %cst_25 = arith.constant dense<0.000000e+00> : vector<8x128xf32>
    %27 = tpu.matmul %25, %26, %cst_25 {dimension_numbers = #tpu.dot_dimension_numbers<[1], [0], [0], [1], [0, 0, 1, 1], [], []>} : vector<8x128xf32>, vector<128x128xf32>, vector<8x128xf32> -> vector<8x128xf32>
    %c0_26 = arith.constant 0 : index
    %c0_27 = arith.constant 0 : index
    %28 = vector.load %arg11[%c0_26, %c0_27] : memref<1x128xf32, #tpu.memory_space<vmem>>, vector<1x128xf32>
    %29 = vector.broadcast %28 : vector<1x128xf32> to vector<8x128xf32>
    %30 = arith.addf %27, %29 : vector<8x128xf32>
    %c0_28 = arith.constant 0 : index
    %c0_29 = arith.constant 0 : index
    %31 = vector.load %arg12[%c0_28, %c0_29] : memref<8x128xf32, #tpu.memory_space<vmem>>, vector<8x128xf32>
    tpu.vector_store %arg12[%c0_28, %c0_29], %30 {strides = array<i32>} : memref<8x128xf32, #tpu.memory_space<vmem>>, vector<8x128xf32>,
    return
  }
  func.func @transform_0(%arg0: i32) -> (i32, i32) {
    %c0_i32 = arith.constant 0 : i32
    %c0_i32_0 = arith.constant 0 : i32
    return %arg0, %c0_i32 : i32, i32
  }
  func.func @transform_1(%arg0: i32) -> (i32, i32) {
    %c0_i32 = arith.constant 0 : i32
    %c0_i32_0 = arith.constant 0 : i32
    return %arg0, %c0_i32 : i32, i32
  }
  func.func @transform_2(%arg0: i32) -> (i32, i32) {
    %c0_i32 = arith.constant 0 : i32
    %c0_i32_0 = arith.constant 0 : i32
    %c0_i32_1 = arith.constant 0 : i32
    return %c0_i32, %c0_i32_0 : i32, i32
  }
  func.func @transform_3(%arg0: i32) -> (i32, i32) {
    %c0_i32 = arith.constant 0 : i32
    %c0_i32_0 = arith.constant 0 : i32
    %c0_i32_1 = arith.constant 0 : i32
    return %c0_i32, %c0_i32_0 : i32, i32
  }
  func.func @transform_4(%arg0: i32) -> (i32, i32) {
    %c0_i32 = arith.constant 0 : i32
    %c0_i32_0 = arith.constant 0 : i32
    %c0_i32_1 = arith.constant 0 : i32
    return %c0_i32, %c0_i32_0 : i32, i32
  }
  func.func @transform_5(%arg0: i32) -> (i32, i32) {
    %c0_i32 = arith.constant 0 : i32
    %c0_i32_0 = arith.constant 0 : i32
    %c0_i32_1 = arith.constant 0 : i32
    return %c0_i32, %c0_i32_0 : i32, i32
  }
  func.func @transform_6(%arg0: i32) -> (i32, i32) {
    %c0_i32 = arith.constant 0 : i32
    %c0_i32_0 = arith.constant 0 : i32
    %c0_i32_1 = arith.constant 0 : i32
    return %c0_i32, %c0_i32_0 : i32, i32
  }
  func.func @transform_7(%arg0: i32) -> (i32, i32) {
    %c0_i32 = arith.constant 0 : i32
    %c0_i32_0 = arith.constant 0 : i32
    %c0_i32_1 = arith.constant 0 : i32
    return %c0_i32, %c0_i32_0 : i32, i32
  }
  func.func @transform_8(%arg0: i32) -> (i32, i32) {
    %c0_i32 = arith.constant 0 : i32
    %c0_i32_0 = arith.constant 0 : i32
    %c0_i32_1 = arith.constant 0 : i32
    return %c0_i32, %c0_i32_0 : i32, i32
  }
  func.func @transform_9(%arg0: i32) -> (i32, i32) {
    %c0_i32 = arith.constant 0 : i32
    %c0_i32_0 = arith.constant 0 : i32
    %c0_i32_1 = arith.constant 0 : i32
    return %c0_i32, %c0_i32_0 : i32, i32
  }
  func.func @transform_10(%arg0: i32) -> (i32, i32) {
    %c0_i32 = arith.constant 0 : i32
    %c0_i32_0 = arith.constant 0 : i32
    %c0_i32_1 = arith.constant 0 : i32
    return %c0_i32, %c0_i32_0 : i32, i32
  }
  func.func @transform_11(%arg0: i32) -> (i32, i32) {
    %c0_i32 = arith.constant 0 : i32
    %c0_i32_0 = arith.constant 0 : i32
    return %arg0, %c0_i32 : i32, i32
  }
}

</mosaic_0001>

<bundles_post_ra>
// kernel: tpu_custom_call.1
= control target key start
LH: loop header
LB: loop body
LE: loop exit
PB: predicated region body
PF: predicated region fallthrough
CT: control target
= control target key end

     0   :  { %16 = vsyncpa [#allocation3], 0  ;;  %s3619_s0 = inlined_call_operand.vmem [shape: f32[16,160], index: 0, kind: input, shape index: {}]   ;;  %s3620_s1 = inlined_call_operand.vmem [shape: f32[16,26], index: 1, kind: input, shape index: {}]   ;;  %s3621_s2 = inlined_call_operand.vmem [shape: f32[160,672], index: 2, kind: input, shape index: {}]   ;;  %s3622_s3 = inlined_call_operand.vmem [shape: f32[26,672], index: 3, kind: input, shape index: {}]   ;;  %s3623_s4 = inlined_call_operand.vmem [shape: f32[1,672], index: 4, kind: input, shape index: {}]   ;;  %s3624_s5 = inlined_call_operand.vmem [shape: f32[672,152], index: 5, kind: input, shape index: {}]   ;;  %s3625_s6 = inlined_call_operand.vmem [shape: f32[1,152], index: 6, kind: input, shape index: {}]   ;;  %s3626_s7 = inlined_call_operand.vmem [shape: f32[152,128], index: 7, kind: input, shape index: {}]   ;;  %s3627_s8 = inlined_call_operand.vmem [shape: f32[1,128], index: 8, kind: input, shape index: {}]   ;;  %s3628_s9 = inlined_call_operand.vmem [shape: f32[128,128], index: 9, kind: input, shape index: {}]   ;;  %s3629_s10 = inlined_call_operand.vmem [shape: f32[1,128], index: 10, kind: input, shape index: {}]   ;;  %s3630_s11 = inlined_call_operand.hbm [shape: f32[16,128], index: 11, kind: output, shape index: {}]  }
   0x1   :  { %18 = vsyncpa [#allocation3 + $0x1], 0  ;;  %s2358_s17 = smov 0   ;;  %s2360_s18 = smov 0  }
   0x2   :  { %s2362_s19 = smov 0   ;;  %s2364_s20 = smov 0  }
   0x3 LB: > { %3634 = sst [smem:[#allocation5_spill]] %s2287_s19  ;;  %s2379_s21 = sadd.s32 4294967295, %s2291_s20   ;;  %s2291_s20 = sphi %s2364_s20, %s3641_s20   ;;  %s2287_s19 = sphi %s2362_s19, %s3643_s19   ;;  %s2283_s18 = sphi %s2360_s18, %s3645_s18   ;;  %s2279_s17 = sphi %s2358_s17, %s3644_s17  }
   0x4   : > { %s1724_s22 = sadd.s32 4294967294, %s2291_s20   ;;  %s2383_s23 = sadd.s32 1, %s2291_s20  }
   0x5   : > { %3635 = sst [smem:[#allocation6_spill]] %s2383_s23  ;;  %s272_s24 = sadd.s32 1, %s2287_s19 }
   0x6   : > { %s269_s25 = ssub.s32 %s2291_s20, %s2383_s23  ;;  %p282_p0 = scmp.ne.s32.totalorder %s2287_s19, %s2283_s18 }
   0x7   : > { %p270_p1 = scmp.eq.s32.totalorder %s269_s25, 0  ;;  %p283_p2 = scmp.eq.s32.totalorder %s2379_s21, 1 }
   0x8   : > { %p288_p3 = scmp.ne.s32.totalorder %s2283_s18, %s2279_s17  ;;  %p289_p4 = scmp.eq.s32.totalorder %s1724_s22, 1 }
   0x9   : > { %s2394_s26 = scalar_select %p270_p1, %s2287_s19, %s272_s24  }
   0xa   : > { %p2396_p5 = por %p283_p2, %p282_p0  ;;  %p2400_p6 = por %p289_p4, %p288_p3 }
   0xb   : > { %3636 = sst [smem:[#allocation7_spill]] %s2394_s26  ;;  %p1727_p7 = scmp.ge.s32.totalorder %s2291_s20, 1 }
   0xc   : > { %p349_p8 = scmp.lt.s32.totalorder %s2291_s20, 3 }
   0xe   : > { %p350_p9 = pnand %p1727_p7, %p349_p8 }
   0xf   : > { %v405_v0 = vld [vmem:[%s3621_s2 + $0x8] sm:$0xff] (!%p350_p9)  ;;  %v411_v1 = vld [vmem:[%s3621_s2 + $0x38] sm:$0xff] (!%p350_p9)  ;;  %v404_v2 = vld [vmem:[%s3621_s2] sm:$0xff] (!%p350_p9)  ;;  %v2293_v7 = vmov (!%p350_p9), 0.0   ;;  %p393_p10 = scmp.lt.s32.totalorder (!%p350_p9), %s2379_s21, 1  ;;  %vm553_vm0 = vcmask (!%p350_p9), 1041408  }
  0x10   : > { %353 = sbr.rel (%p350_p9) target bundleno = 1044 (0x414), region = 64  ;;  %v1835_v3 = vpack.c.bf16 (!%p350_p9), %v411_v1, %v405_v0  ;;  %v410_v4 = vld [vmem:[%s3621_s2 + $0x30] sm:$0xff] (!%p350_p9)  ;;  %v417_v5 = vld [vmem:[%s3621_s2 + $0x68] sm:$0xff] (!%p350_p9)  ;;  %v423_v6 = vld [vmem:[%s3621_s2 + $0x98] sm:$0xff] (!%p350_p9)  ;;  %636 = vmatprep.mubr.f32.mxu1 (!%p350_p9), %v2293_v7  ;;  %vm2294_vm1 = vmmov (!%p350_p9), 1   ;;  %vm785_vm3 = vcmask (!%p350_p9), 261120  }
  0x11   : > { %v1837_v8 = vpack.c.bf16 (!%p350_p9), %v410_v4, %v404_v2  ;;  %v1839_v9 = vpack.c.bf16 (!%p350_p9), %v423_v6, %v417_v5  ;;  %v416_v10 = vld [vmem:[%s3621_s2 + $0x60] sm:$0xff] (!%p350_p9)  ;;  %v422_v11 = vld [vmem:[%s3621_s2 + $0x90] sm:$0xff] (!%p350_p9)  ;;  %v429_v12 = vld [vmem:[%s3621_s2 + $0xc8] sm:$0xff] (!%p350_p9)  ;;  %vm549_vm4 = vcmask (!%p350_p9), 211968   ;;  %vm1470_vm5 = vcmask (!%p350_p9), 195584   ;;  %s1749_s13 = sshll.u32 (!%p350_p9), %s2379_s21, 7 }
  0x12   : > { %1836 = vmatprep.subr.bf16.mxu0 (!%p350_p9), %v1835_v3  ;;  %v435_v13 = vld [vmem:[%s3621_s2 + $0xf8] sm:$0xff] (!%p350_p9)  ;;  %v1841_v14 = vpack.c.bf16 (!%p350_p9), %v422_v11, %v416_v10  ;;  %v428_v16 = vld [vmem:[%s3621_s2 + $0xc0] sm:$0xff] (!%p350_p9)  ;;  %v434_v17 = vld [vmem:[%s3621_s2 + $0xf0] sm:$0xff] (!%p350_p9)  ;;  %vm2296_vm6 = vmmov (!%p350_p9), 0   ;;  %s3577_s22 = scalar_lea.hbm (!%p350_p9), %s3630_s11, %s1749_s13 }
  0x13   : > { %1838 = vmatpush1.bf16.msra.mxu0 (!%p350_p9), %v1837_v8  ;;  %v1843_v15 = vpack.c.bf16 (!%p350_p9), %v435_v13, %v429_v12  ;;  %v441_v18 = vld [vmem:[%s3621_s2 + $0x128] sm:$0xff] (!%p350_p9)  ;;  %v447_v19 = vld [vmem:[%s3621_s2 + $0x158] sm:$0xff] (!%p350_p9)  ;;  %v1845_v20 = vpack.c.bf16 (!%p350_p9), %v434_v17, %v428_v16  ;;  %v440_v22 = vld [vmem:[%s3621_s2 + $0x120] sm:$0xff] (!%p350_p9) }
  0x14   : > { %1840 = vmatprep.subr.bf16.mxu0 (!%p350_p9), %v1839_v9  ;;  %v1847_v21 = vpack.c.bf16 (!%p350_p9), %v447_v19, %v441_v18  ;;  %v446_v23 = vld [vmem:[%s3621_s2 + $0x150] sm:$0xff] (!%p350_p9)  ;;  %v453_v24 = vld [vmem:[%s3621_s2 + $0x188] sm:$0xff] (!%p350_p9)  ;;  %v459_v25 = vld [vmem:[%s3621_s2 + $0x1b8] sm:$0xff] (!%p350_p9) }
  0x15   : > { %v526_v26 = vld [vmem:[%s3622_s3 + $0x8] sm:$0xff] (!%p350_p9)  ;;  %v532_v27 = vld [vmem:[%s3622_s3 + $0x38] sm:$0xff] (!%p350_p9)  ;;  %v525_v28 = vld [vmem:[%s3622_s3] sm:$0xff] (!%p350_p9)  ;;  %v1849_v30 = vpack.c.bf16 (!%p350_p9), %v446_v23, %v440_v22  ;;  %v1851_v36 = vpack.c.bf16 (!%p350_p9), %v459_v25, %v453_v24 }
  0x16   : > { %v531_v29 = vld [vmem:[%s3622_s3 + $0x30] sm:$0xff] (!%p350_p9)  ;;  %v452_v31 = vld [vmem:[%s3621_s2 + $0x180] sm:$0xff] (!%p350_p9)  ;;  %v465_v33 = vld [vmem:[%s3621_s2 + $0x1e8] sm:$0xff] (!%p350_p9)  ;;  %v1805_v34 = vpack.c.bf16 (!%p350_p9), %v532_v27, %v526_v26 }
  0x17   : > { %s2451_s24 = scalar_select %p393_p10, %s2379_s21, 1  ;;  %1842 = vmatpush1.bf16.msra.mxu0 %v1841_v14  ;;  %v458_v32 = vld [vmem:[%s3621_s2 + $0x1b0] sm:$0xff]  ;;  %v1807_v35 = vpack.c.bf16 %v531_v29, %v525_v28  ;;  %v471_v37 = vld [vmem:[%s3621_s2 + $0x218] sm:$0xff]  ;;  %v538_v38 = vld [vmem:[%s3622_s3 + $0x68] sm:$0xff] }
  0x18   : > { %1844 = vmatprep.subr.bf16.mxu0 %v1843_v15  ;;  %v544_v39 = vld [vmem:[%s3622_s3 + $0x98] sm:$0x3]  ;;  %1806 = vmatprep.subr.bf16.mxu1 %v1805_v34  ;;  %vm2503_vm2 = vmpackc.low %vm553_vm0, %vm2294_vm1  ;;  %v537_v42 = vld [vmem:[%s3622_s3 + $0x60] sm:$0xff]  ;;  %v1853_v45 = vpack.c.bf16 %v458_v32, %v452_v31  ;;  %v1855_v47 = vpack.c.bf16 %v471_v37, %v465_v33  ;;  %s2297_s21 = smov [#allocation2]  }
  0x19   : > { %s1752_s19 = sshll.u32 %s2451_s24, 4  ;;  %s1731_s26 = sshll.u32 %s2451_s24, 3  ;;  %v1809_v40 = vpack.c.bf16 %v544_v39, %v538_v38  ;;  %v543_v43 = vld [vmem:[%s3622_s3 + $0x90] sm:$0x3]  ;;  %1808 = vmatpush1.bf16.msra.mxu1 %v1807_v35  ;;  %v464_v48 = vld [vmem:[%s3621_s2 + $0x1e0] sm:$0xff]  ;;  %v477_v50 = vld [vmem:[%s3621_s2 + $0x248] sm:$0xff] }
  0x1a   : > { %s2500_s23 = scalar_lea.vmem %s3619_s0, %s1752_s19  ;;  %v1812_v44 = vpack.c.bf16 %v543_v43, %v537_v42  ;;  %s401_s12 = scalar_lea.vmem %s3620_s1, %s1731_s26  ;;  %v470_v49 = vld [vmem:[%s3621_s2 + $0x210] sm:$0xff]  ;;  %v483_v51 = vld [vmem:[%s3621_s2 + $0x278] sm:$0xff]  ;;  %v476_v55 = vld [vmem:[%s3621_s2 + $0x240] sm:$0xff] }
  0x1b   : > { %1846 = vmatpush1.bf16.msra.mxu0 %v1845_v20  ;;  %1811 = vmatprep.subr.msk.bf16.mxu1 %vm2503_vm2, %v1809_v40  ;;  %v2519_v46 = vld [vmem:[%s2500_s23 + $0x8] sm:$0xff]  ;;  %v2537_v52 = vld [vmem:[%s401_s12] sm:$0xff]  ;;  %v1857_v53 = vpack.c.bf16 %v470_v49, %v464_v48  ;;  %v1859_v54 = vpack.c.bf16 %v483_v51, %v477_v50  ;;  %v482_v56 = vld [vmem:[%s3621_s2 + $0x270] sm:$0xff]  ;;  %s390_s24 = sand.u32 1, %s2283_s18   ;;  %s2233_s29 = sshll.u32 %s2297_s21, 4  ;;  %s2234_s29 = int_to_ptr.vmem [resolvable:$false] %s2233_s29 }
  0x1c   : > { %1848 = vmatprep.subr.bf16.mxu0 %v1847_v21  ;;  %1741 = vmatprep.mubr.msk.f32.mxu0 %vm785_vm3, %v2519_v46  ;;  %v489_v57 = vld [vmem:[%s3621_s2 + $0x2a8] sm:$0xff]  ;;  %v495_v58 = vld [vmem:[%s3621_s2 + $0x2d8] sm:$0xff]  ;;  %v1861_v59 = vpack.c.bf16 %v482_v56, %v476_v55  ;;  %v488_v61 = vld [vmem:[%s3621_s2 + $0x2a0] sm:$0xff]  ;;  %s1728_s19 = sshll.u32 %s390_s24, 3  ;;  %s1640_s25 = scalar_lea.sflag [#allocation3], %s390_s24 }
  0x1d   : > { %1814 = vmatpush1.bf16.msk.msra.mxu1 %vm2503_vm2, %v1812_v44  ;;  %v1863_v60 = vpack.c.bf16 %v495_v58, %v489_v57  ;;  %v494_v62 = vld [vmem:[%s3621_s2 + $0x2d0] sm:$0xff]  ;;  %v501_v63 = vld [vmem:[%s3621_s2 + $0x308] sm:$0xff]  ;;  %v507_v0 = vld [vmem:[%s3621_s2 + $0x338] sm:$0xff]  ;;  %s392_s14 = scalar_lea.vmem [#allocation2], %s1728_s19  ;;  %s2235_s19 = scalar_lea.vmem %s2234_s29, 256 }
  0x1e   : > { %v1865_v1 = vpack.c.bf16 %v494_v62, %v488_v61  ;;  %v500_v2 = vld [vmem:[%s3621_s2 + $0x300] sm:$0xff]  ;;  %v528_v3 = vld [vmem:[%s3622_s3 + $0x18] sm:$0xff]  ;;  %v1867_v4 = vpack.c.bf16 %v507_v0, %v501_v63  ;;  %v506_v5 = vld [vmem:[%s3621_s2 + $0x330] sm:$0xff]  ;;  %s1653_s15 = sshll.u32 %s392_s14, 4  ;;  %s3579_s15 = int_to_ptr.vmem [resolvable:$true] %s1653_s15 }
  0x1f   : > { %1850 = vmatpush1.bf16.msra.mxu0 %v1849_v30  ;;  %v513_v6 = vld [vmem:[%s3621_s2 + $0x368] sm:$0xff]  ;;  %v519_v9 = vld [vmem:[%s3621_s2 + $0x398] sm:$0xff]  ;;  %v527_v11 = vld [vmem:[%s3622_s3 + $0x10] sm:$0xff]  ;;  %v1869_v16 = vpack.c.bf16 %v506_v5, %v500_v2  ;;  %s2229_s26 = scalar_lea.vmem %s3579_s15, 128  ;;  %p2236_p0 = scmp.lt.s32.totalorder %s3579_s15, %s2234_s29 }
  0x20   : > { %1852 = vmatprep.subr.bf16.mxu0 %v1851_v36  ;;  %1734 = vmatmul.mubr.msk.f32.vlgmr.msra.gmra.mrb[0].mxu1 %vm549_vm4, %v2537_v52  ;;  %v534_v8 = vld [vmem:[%s3622_s3 + $0x48] sm:$0xff]  ;;  %v533_v12 = vld [vmem:[%s3622_s3 + $0x40] sm:$0xff]  ;;  %v540_v14 = vld [vmem:[%s3622_s3 + $0x78] sm:$0xff]  ;;  %v1871_v19 = vpack.c.bf16 %v519_v9, %v513_v6  ;;  %p2230_p11 = scmp.ne.s32.totalorder %s3579_s15, %s2229_s26  ;;  %p2237_p1 = scmp.lt.s32.totalorder %s2235_s19, %s2229_s26 }
  0x21   : > { %707 = vmatprep.mubr.f32.mxu1 %v2293_v7  ;;  %v1815_v10 = vpack.c.bf16 %v534_v8, %v528_v3  ;;  %v1817_v13 = vpack.c.bf16 %v533_v12, %v527_v11  ;;  %v546_v15 = vld [vmem:[%s3622_s3 + $0xa8] sm:$0x3]  ;;  %v539_v18 = vld [vmem:[%s3622_s3 + $0x70] sm:$0xff]  ;;  %v512_v20 = vld [vmem:[%s3621_s2 + $0x360] sm:$0xff] }
  0x22   : > { %v1819_v17 = vpack.c.bf16 %v546_v15, %v540_v14  ;;  %v518_v21 = vld [vmem:[%s3621_s2 + $0x390] sm:$0xff]  ;;  %v545_v22 = vld [vmem:[%s3622_s3 + $0xa0] sm:$0x3]  ;;  %v407_v23 = vld [vmem:[%s3621_s2 + $0x18] sm:$0xff]  ;;  %p2231_p12 = pnand %p2230_p11, %p2396_p5  ;;  %p2238_p2 = por %p2237_p1, %p2236_p0 }
  0x23   : > { %1854 = vmatpush1.bf16.msra.mxu0 %v1853_v45  ;;  %1816 = vmatprep.subr.bf16.mxu1 %v1815_v10  ;;  %v413_v24 = vld [vmem:[%s3621_s2 + $0x48] sm:$0xff]  ;;  %v1822_v25 = vpack.c.bf16 %v545_v22, %v539_v18  ;;  %v1873_v26 = vpack.c.bf16 %v518_v21, %v512_v20  ;;  %v406_v28 = vld [vmem:[%s3621_s2 + $0x10] sm:$0xff]  ;;  %v412_v29 = vld [vmem:[%s3621_s2 + $0x40] sm:$0xff] }
  0x24   : > { %1856 = vmatprep.subr.bf16.mxu0 %v1855_v47  ;;  %1818 = vmatpush1.bf16.msra.mxu1 %v1817_v13  ;;  %v1875_v27 = vpack.c.bf16 %v413_v24, %v407_v23  ;;  %v419_v30 = vld [vmem:[%s3621_s2 + $0x78] sm:$0xff]  ;;  %v425_v31 = vld [vmem:[%s3621_s2 + $0xa8] sm:$0xff]  ;;  %v2631_v32 = vld [vmem:[%s2500_s23] sm:$0xff]  ;;  %v1877_v33 = vpack.c.bf16 %v412_v29, %v406_v28  ;;  %p2232_p13 = pneg %p2231_p12 }
  0x25   : > { %1821 = vmatprep.subr.msk.bf16.mxu1 %vm2503_vm2, %v1819_v17  ;;  %v1879_v34 = vpack.c.bf16 %v425_v31, %v419_v30  ;;  %v418_v35 = vld [vmem:[%s3621_s2 + $0x70] sm:$0xff]  ;;  %v424_v36 = vld [vmem:[%s3621_s2 + $0xa0] sm:$0xff]  ;;  %v431_v37 = vld [vmem:[%s3621_s2 + $0xd8] sm:$0xff] }
  0x26   : > { %v437_v38 = vld [vmem:[%s3621_s2 + $0x108] sm:$0xff]  ;;  %v1881_v39 = vpack.c.bf16 %v424_v36, %v418_v35  ;;  %v430_v40 = vld [vmem:[%s3621_s2 + $0xd0] sm:$0xff]  ;;  %v536_v43 = vld [vmem:[%s3622_s3 + $0x58] sm:$0xff]  ;;  %p2239_p3 = pnand %p2238_p2, %p2232_p13 }
  0x27   : > { %1858 = vmatpush1.bf16.msra.mxu0 %v1857_v53  ;;  %v530_v42 = vld [vmem:[%s3622_s3 + $0x28] sm:$0xff]  ;;  %v1883_v44 = vpack.c.bf16 %v437_v38, %v431_v37  ;;  %v436_v45 = vld [vmem:[%s3621_s2 + $0x100] sm:$0xff]  ;;  %v535_v49 = vld [vmem:[%s3622_s3 + $0x50] sm:$0xff] }
  0x28   : > { %1860 = vmatprep.subr.bf16.mxu0 %v1859_v54  ;;  %1824 = vmatpush1.bf16.msk.msra.mxu1 %vm2503_vm2, %v1822_v25  ;;  %v1825_v47 = vpack.c.bf16 %v536_v43, %v530_v42  ;;  %v529_v48 = vld [vmem:[%s3622_s3 + $0x20] sm:$0xff]  ;;  %v443_v50 = vld [vmem:[%s3621_s2 + $0x138] sm:$0xff]  ;;  %v449_v51 = vld [vmem:[%s3621_s2 + $0x168] sm:$0xff]  ;;  %v1885_v58 = vpack.c.bf16 %v436_v45, %v430_v40 }
  0x29   : > { %v1827_v53 = vpack.c.bf16 %v535_v49, %v529_v48  ;;  %v542_v54 = vld [vmem:[%s3622_s3 + $0x88] sm:$0xff]  ;;  %v442_v55 = vld [vmem:[%s3621_s2 + $0x130] sm:$0xff]  ;;  %v448_v56 = vld [vmem:[%s3621_s2 + $0x160] sm:$0xff]  ;;  %v1887_v63 = vpack.c.bf16 %v449_v51, %v443_v50 }
  0x2a   : > { %1826 = vmatprep.subr.bf16.mxu1 %v1825_v47  ;;  %v548_v57 = vld [vmem:[%s3622_s3 + $0xb8] sm:$0x3]  ;;  %v541_v61 = vld [vmem:[%s3622_s3 + $0x80] sm:$0xff]  ;;  %v547_v62 = vld [vmem:[%s3622_s3 + $0xb0] sm:$0x3]  ;;  %v1889_v10 = vpack.c.bf16 %v448_v56, %v442_v55 }
  0x2b   : > { %1862 = vmatpush1.bf16.msra.mxu0 %v1861_v59  ;;  %1737 = vmatmul.mubr.msk.f32.vlgmr.msra.gmra.mrb[2].mxu1 %vm549_vm4, %v2537_v52  ;;  %v455_v59 = vld [vmem:[%s3621_s2 + $0x198] sm:$0xff]  ;;  %v461_v0 = vld [vmem:[%s3621_s2 + $0x1c8] sm:$0xff]  ;;  %v1046_v5 = vld [vmem:[%s3624_s5] sm:$0xff] }
  0x2c   : > { %1864 = vmatprep.subr.bf16.mxu0 %v1863_v60  ;;  %778 = vmatprep.mubr.f32.mxu1 %v2293_v7  ;;  %v1829_v60 = vpack.c.bf16 %v548_v57, %v542_v54  ;;  %v1047_v2 = vld [vmem:[%s3624_s5 + $0x8] sm:$0xff]  ;;  %v1049_v3 = vld [vmem:[%s3624_s5 + $0x18] sm:$0xff]  ;;  %v1048_v6 = vld [vmem:[%s3624_s5 + $0x10] sm:$0xff]  ;;  %v1891_v14 = vpack.c.bf16 %v461_v0, %v455_v59 }
  0x2d   : > { %1828 = vmatpush1.bf16.msra.mxu1 %v1827_v53  ;;  %v1051_v8 = vld [vmem:[%s3624_s5 + $0x28] sm:$0xff]  ;;  %v1053_v9 = vld [vmem:[%s3624_s5 + $0x38] sm:$0xff]  ;;  %v454_v11 = vld [vmem:[%s3621_s2 + $0x190] sm:$0xff]  ;;  %v1957_v13 = vpack.c.bf16 %v1048_v6, %v1046_v5 }
  0x2e   : > { %1831 = vmatprep.subr.msk.bf16.mxu1 %vm2503_vm2, %v1829_v60  ;;  %v460_v12 = vld [vmem:[%s3621_s2 + $0x1c0] sm:$0xff]  ;;  %v467_v15 = vld [vmem:[%s3621_s2 + $0x1f8] sm:$0xff]  ;;  %v1052_v18 = vld [vmem:[%s3624_s5 + $0x30] sm:$0xff] }
  0x2f   : > { %1866 = vmatpush1.bf16.msra.mxu0 %v1865_v1  ;;  %v1832_v1 = vpack.c.bf16 %v547_v62, %v541_v61  ;;  %v1050_v17 = vld [vmem:[%s3624_s5 + $0x20] sm:$0xff]  ;;  %v473_v41 = vld [vmem:[%s3621_s2 + $0x228] sm:$0xff]  ;;  %v1057_v20 = vld [vmem:[%s3624_s5 + $0x58] sm:$0xff]  ;;  %v1893_v21 = vpack.c.bf16 %v460_v12, %v454_v11 }
  0x30   : > { %1868 = vmatprep.subr.bf16.mxu0 %v1867_v4  ;;  %v1955_v4 = vpack.c.bf16 %v1049_v3, %v1047_v2  ;;  %v466_v22 = vld [vmem:[%s3621_s2 + $0x1f0] sm:$0xff]  ;;  %v472_v23 = vld [vmem:[%s3621_s2 + $0x220] sm:$0xff]  ;;  %v1961_v24 = vpack.c.bf16 %v1052_v18, %v1050_v17  ;;  %v1895_v25 = vpack.c.bf16 %v473_v41, %v467_v15  ;;  %v485_v29 = vld [vmem:[%s3621_s2 + $0x288] sm:$0xff] }
  0x31   : > { %1834 = vmatpush1.bf16.msk.msra.mxu1 %vm2503_vm2, %v1832_v1  ;;  %v1056_v28 = vld [vmem:[%s3624_s5 + $0x50] sm:$0xff]  ;;  %v1059_v30 = vld [vmem:[%s3624_s5 + $0x68] sm:$0xff]  ;;  %v1061_v31 = vld [vmem:[%s3624_s5 + $0x78] sm:$0xff] }
  0x32   : > { %1956 = vmatprep.subr.bf16.mxu1 %v1955_v4  ;;  %v484_v35 = vld [vmem:[%s3621_s2 + $0x280] sm:$0xff]  ;;  %v491_v38 = vld [vmem:[%s3621_s2 + $0x2b8] sm:$0xff]  ;;  %v1060_v42 = vld [vmem:[%s3624_s5 + $0x70] sm:$0xff] }
  0x33   : > { %1870 = vmatpush1.bf16.msra.mxu0 %v1869_v16  ;;  %v1959_v16 = vpack.c.bf16 %v1053_v9, %v1051_v8  ;;  %v1058_v40 = vld [vmem:[%s3624_s5 + $0x60] sm:$0xff]  ;;  %v497_v43 = vld [vmem:[%s3621_s2 + $0x2e8] sm:$0xff]  ;;  %v1065_v45 = vld [vmem:[%s3624_s5 + $0x98] sm:$0xff] }
  0x34   : > { %1872 = vmatprep.subr.bf16.mxu0 %v1871_v19  ;;  %v1055_v19 = vld [vmem:[%s3624_s5 + $0x48] sm:$0xff]  ;;  %1740 = vmatmul.mubr.msk.f32.vlgmr.msra.gmra.mrb[4].mxu1 %vm549_vm4, %v2537_v52  ;;  %v490_v48 = vld [vmem:[%s3621_s2 + $0x2b0] sm:$0xff]  ;;  %v496_v49 = vld [vmem:[%s3621_s2 + $0x2e0] sm:$0xff]  ;;  %v1969_v50 = vpack.c.bf16 %v1060_v42, %v1058_v40  ;;  %v1903_v51 = vpack.c.bf16 %v497_v43, %v491_v38 }
  0x35   : > { %1958 = vmatpush1.bf16.msra.mxu1 %v1957_v13  ;;  %v1963_v52 = vpack.c.bf16 %v1057_v20, %v1055_v19  ;;  %v503_v53 = vld [vmem:[%s3621_s2 + $0x318] sm:$0xff]  ;;  %v1062_v55 = vld [vmem:[%s3624_s5 + $0x80] sm:$0xff]  ;;  %v1064_v56 = vld [vmem:[%s3624_s5 + $0x90] sm:$0xff]  ;;  %v1905_v60 = vpack.c.bf16 %v496_v49, %v490_v48 }
  0x36   : > { %1960 = vmatprep.subr.bf16.mxu1 %v1959_v16  ;;  %v509_v57 = vld [vmem:[%s3621_s2 + $0x348] sm:$0xff]  ;;  %v1069_v59 = vld [vmem:[%s3624_s5 + $0xb8] sm:$0xff]  ;;  %v502_v61 = vld [vmem:[%s3621_s2 + $0x310] sm:$0xff] }
  0x37   : > { %1874 = vmatpush1.bf16.msra.mxu0 %v1873_v26  ;;  %v479_v26 = vld [vmem:[%s3621_s2 + $0x258] sm:$0xff]  ;;  %v508_v62 = vld [vmem:[%s3621_s2 + $0x340] sm:$0xff]  ;;  %v1907_v0 = vpack.c.bf16 %v509_v57, %v503_v53  ;;  %v1068_v4 = vld [vmem:[%s3624_s5 + $0xb0] sm:$0xff] }
  0x38   : > { %1876 = vmatprep.subr.bf16.mxu0 %v1875_v27  ;;  %v1054_v27 = vld [vmem:[%s3624_s5 + $0x40] sm:$0xff]  ;;  %v1899_v37 = vpack.c.bf16 %v485_v29, %v479_v26  ;;  %v515_v1 = vld [vmem:[%s3621_s2 + $0x378] sm:$0xff]  ;;  %v521_v5 = vld [vmem:[%s3621_s2 + $0x3a8] sm:$0xff]  ;;  %v1909_v9 = vpack.c.bf16 %v508_v62, %v502_v61 }
  0x39   : > { %1962 = vmatpush1.bf16.msra.mxu1 %v1961_v24  ;;  %v1965_v36 = vpack.c.bf16 %v1056_v28, %v1054_v27  ;;  %v1066_v3 = vld [vmem:[%s3624_s5 + $0xa0] sm:$0xff]  ;;  %v1071_v6 = vld [vmem:[%s3624_s5 + $0xc8] sm:$0xff]  ;;  %v1073_v8 = vld [vmem:[%s3624_s5 + $0xd8] sm:$0xff]  ;;  %v1911_v13 = vpack.c.bf16 %v521_v5, %v515_v1 }
  0x3a   : > { %854 = vmatmul.mubr.f32.vlgmr.msra.gmra.mrb[0].mxu0 %v2631_v32  ;;  %1964 = vmatprep.subr.bf16.mxu1 %v1963_v52  ;;  %v520_v11 = vld [vmem:[%s3621_s2 + $0x3a0] sm:$0xff]  ;;  %v1977_v12 = vpack.c.bf16 %v1068_v4, %v1066_v3  ;;  %v1979_v15 = vpack.c.bf16 %v1073_v8, %v1071_v6  ;;  %v1072_v17 = vld [vmem:[%s3624_s5 + $0xd0] sm:$0xff]  ;;  %v415_v18 = vld [vmem:[%s3621_s2 + $0x58] sm:$0xff] }
  0x3b   : > { %1878 = vmatpush1.bf16.msra.mxu0 %v1877_v33  ;;  %1742 = vmatprep.mubr.msk.f32.mxu0 %vm785_vm3, %v2519_v46  ;;  %v1897_v33 = vpack.c.bf16 %v472_v23, %v466_v22  ;;  %v1070_v16 = vld [vmem:[%s3624_s5 + $0xc0] sm:$0xff]  ;;  %v1075_v41 = vld [vmem:[%s3624_s5 + $0xe8] sm:$0xff]  ;;  %v1077_v19 = vld [vmem:[%s3624_s5 + $0xf8] sm:$0xff] }
  0x3c   : > { %1880 = vmatprep.subr.bf16.mxu0 %v1879_v34  ;;  %v478_v34 = vld [vmem:[%s3621_s2 + $0x250] sm:$0xff]  ;;  %v408_v23 = vld [vmem:[%s3621_s2 + $0x20] sm:$0xff]  ;;  %v1983_v26 = vpack.c.bf16 %v1077_v19, %v1075_v41  ;;  %v427_v52 = vld [vmem:[%s3621_s2 + $0xb8] sm:$0xff] }
  0x3d   : > { %v1901_v47 = vpack.c.bf16 %v484_v35, %v478_v34  ;;  %1966 = vmatpush1.bf16.msra.mxu1 %v1965_v36  ;;  %v414_v24 = vld [vmem:[%s3621_s2 + $0x50] sm:$0xff]  ;;  %v1074_v27 = vld [vmem:[%s3624_s5 + $0xe0] sm:$0xff]  ;;  %v1079_v29 = vld [vmem:[%s3624_s5 + $0x108] sm:$0xff] }
  0x3e   : > { %v1076_v28 = vld [vmem:[%s3624_s5 + $0xf0] sm:$0xff]  ;;  %v420_v34 = vld [vmem:[%s3621_s2 + $0x80] sm:$0xff]  ;;  %v433_v36 = vld [vmem:[%s3621_s2 + $0xe8] sm:$0xff] }
  0x3f   : > { %1882 = vmatpush1.bf16.msra.mxu0 %v1881_v39  ;;  %v1967_v39 = vpack.c.bf16 %v1061_v31, %v1059_v30  ;;  %v1081_v30 = vld [vmem:[%s3624_s5 + $0x118] sm:$0xff]  ;;  %v1917_v31 = vpack.c.bf16 %v414_v24, %v408_v23  ;;  %v426_v35 = vld [vmem:[%s3621_s2 + $0xb0] sm:$0xff]  ;;  %v1078_v40 = vld [vmem:[%s3624_s5 + $0x100] sm:$0xff] }
  0x40   : > { %1884 = vmatprep.subr.bf16.mxu0 %v1883_v44  ;;  %v1063_v44 = vld [vmem:[%s3624_s5 + $0x88] sm:$0xff]  ;;  %v439_v38 = vld [vmem:[%s3621_s2 + $0x118] sm:$0xff]  ;;  %v1080_v42 = vld [vmem:[%s3624_s5 + $0x110] sm:$0xff] }
  0x41   : > { %1968 = vmatprep.subr.bf16.mxu1 %v1967_v39  ;;  %v1971_v54 = vpack.c.bf16 %v1065_v45, %v1063_v44  ;;  %v1987_v39 = vpack.c.bf16 %v1081_v30, %v1079_v29  ;;  %v1083_v43 = vld [vmem:[%s3624_s5 + $0x128] sm:$0xff]  ;;  %v1085_v44 = vld [vmem:[%s3624_s5 + $0x138] sm:$0xff]  ;;  %v1921_v45 = vpack.c.bf16 %v426_v35, %v420_v34  ;;  %v432_v48 = vld [vmem:[%s3621_s2 + $0xe0] sm:$0xff] }
  0x42   : > { %1970 = vmatpush1.bf16.msra.mxu1 %v1969_v50  ;;  %v438_v49 = vld [vmem:[%s3621_s2 + $0x110] sm:$0xff]  ;;  %v445_v50 = vld [vmem:[%s3621_s2 + $0x148] sm:$0xff]  ;;  %v1991_v53 = vpack.c.bf16 %v1085_v44, %v1083_v43  ;;  %v1089_v57 = vld [vmem:[%s3624_s5 + $0x158] sm:$0xff] }
  0x43   : > { %1886 = vmatpush1.bf16.msra.mxu0 %v1885_v58  ;;  %v1067_v58 = vld [vmem:[%s3624_s5 + $0xa8] sm:$0xff]  ;;  %1972 = vmatprep.subr.bf16.mxu1 %v1971_v54  ;;  %v1082_v54 = vld [vmem:[%s3624_s5 + $0x120] sm:$0xff]  ;;  %v450_v61 = vld [vmem:[%s3621_s2 + $0x170] sm:$0xff] }
  0x44   : > { %1888 = vmatprep.subr.bf16.mxu0 %v1887_v63  ;;  %v1973_v63 = vpack.c.bf16 %v1064_v56, %v1062_v55  ;;  %v1975_v2 = vpack.c.bf16 %v1069_v59, %v1067_v58  ;;  %v1084_v55 = vld [vmem:[%s3624_s5 + $0x130] sm:$0xff]  ;;  %v1087_v56 = vld [vmem:[%s3624_s5 + $0x148] sm:$0xff]  ;;  %v1925_v58 = vpack.c.bf16 %v438_v49, %v432_v48  ;;  %v1093_v5 = vld [vmem:[%s3624_s5 + $0x178] sm:$0xff] }
  0x45   : > { %v457_v62 = vld [vmem:[%s3621_s2 + $0x1a8] sm:$0xff]  ;;  %v1995_v1 = vpack.c.bf16 %v1089_v57, %v1087_v56  ;;  %v1088_v3 = vld [vmem:[%s3624_s5 + $0x150] sm:$0xff]  ;;  %v487_v24 = vld [vmem:[%s3621_s2 + $0x298] sm:$0xff] }
  0x46   : > { %1974 = vmatpush1.bf16.msra.mxu1 %v1973_v63  ;;  %v1993_v63 = vpack.c.bf16 %v1084_v55, %v1082_v54  ;;  %v1091_v4 = vld [vmem:[%s3624_s5 + $0x168] sm:$0xff]  ;;  %v492_v43 = vld [vmem:[%s3621_s2 + $0x2c0] sm:$0xff]  ;;  %v498_v44 = vld [vmem:[%s3621_s2 + $0x2f0] sm:$0xff] }
  0x47   : > { %1890 = vmatpush1.bf16.msra.mxu0 %v1889_v10  ;;  %v514_v10 = vld [vmem:[%s3621_s2 + $0x370] sm:$0xff]  ;;  %1976 = vmatprep.subr.bf16.mxu1 %v1975_v2  ;;  %v1086_v2 = vld [vmem:[%s3624_s5 + $0x140] sm:$0xff]  ;;  %v493_v34 = vld [vmem:[%s3621_s2 + $0x2c8] sm:$0xff]  ;;  %v1945_v49 = vpack.c.bf16 %v498_v44, %v492_v43 }
  0x48   : > { %1892 = vmatprep.subr.bf16.mxu0 %v1891_v14  ;;  %v409_v14 = vld [vmem:[%s3621_s2 + $0x28] sm:$0xff]  ;;  %v1913_v20 = vpack.c.bf16 %v520_v11, %v514_v10  ;;  %v462_v10 = vld [vmem:[%s3621_s2 + $0x1d0] sm:$0xff]  ;;  %v511_v48 = vld [vmem:[%s3621_s2 + $0x358] sm:$0xff] }
  0x49   : > { %v1915_v22 = vpack.c.bf16 %v415_v18, %v409_v14  ;;  %v469_v11 = vld [vmem:[%s3621_s2 + $0x208] sm:$0xff]  ;;  %v1999_v14 = vpack.c.bf16 %v1093_v5, %v1091_v4  ;;  %v1097_v18 = vld [vmem:[%s3624_s5 + $0x198] sm:$0xff]  ;;  %v516_v57 = vld [vmem:[%s3621_s2 + $0x380] sm:$0xff] }
  0x4a   : > { %1978 = vmatpush1.bf16.msra.mxu1 %v1977_v12  ;;  %v1997_v12 = vpack.c.bf16 %v1088_v3, %v1086_v2  ;;  %v523_v54 = vld [vmem:[%s3621_s2 + $0x3b8] sm:$0xff]  ;;  %v1106_v4 = vld [vmem:[%s3624_s5 + $0x1e0] sm:$0xff]  ;;  %v1108_v5 = vld [vmem:[%s3624_s5 + $0x1f0] sm:$0xff] }
  0x4b   : > { %1894 = vmatpush1.bf16.msra.mxu0 %v1893_v21  ;;  %v1981_v21 = vpack.c.bf16 %v1072_v17, %v1070_v16  ;;  %1980 = vmatprep.subr.bf16.mxu1 %v1979_v15  ;;  %v1090_v15 = vld [vmem:[%s3624_s5 + $0x160] sm:$0xff]  ;;  %v1092_v16 = vld [vmem:[%s3624_s5 + $0x170] sm:$0xff]  ;;  %v1095_v17 = vld [vmem:[%s3624_s5 + $0x188] sm:$0xff] }
  0x4c   : > { %1896 = vmatprep.subr.bf16.mxu0 %v1895_v25  ;;  %v421_v25 = vld [vmem:[%s3621_s2 + $0x88] sm:$0xff]  ;;  %v2001_v23 = vpack.c.bf16 %v1092_v16, %v1090_v15  ;;  %v1109_v2 = vld [vmem:[%s3624_s5 + $0x1f8] sm:$0xff]  ;;  %v1446_v15 = vld [vmem:[%s3626_s7 + $0x10] sm:$0xff]  ;;  %v2295_v16 = vmov 0.0|0.0  }
  0x4e   : > { %1982 = vmatpush1.bf16.msra.mxu1 %v1981_v21  ;;  %v474_v21 = vld [vmem:[%s3621_s2 + $0x230] sm:$0xff] }
  0x4f   : > { %1898 = vmatpush1.bf16.msra.mxu0 %v1897_v33  ;;  %v1919_v33 = vpack.c.bf16 %v427_v52, %v421_v25  ;;  %1984 = vmatprep.subr.bf16.mxu1 %v1983_v26  ;;  %v2003_v25 = vpack.c.bf16 %v1097_v18, %v1095_v17  ;;  %v1094_v26 = vld [vmem:[%s3624_s5 + $0x180] sm:$0xff]  ;;  %v1096_v52 = vld [vmem:[%s3624_s5 + $0x190] sm:$0xff]  ;;  %v1447_v18 = vld [vmem:[%s3626_s7 + $0x18] sm:$0xff] }
  0x50   : > { %1900 = vmatprep.subr.bf16.mxu0 %v1899_v37  ;;  %v1985_v37 = vpack.c.bf16 %v1076_v28, %v1074_v27  ;;  %v1099_v27 = vld [vmem:[%s3624_s5 + $0x1a8] sm:$0xff]  ;;  %v1101_v28 = vld [vmem:[%s3624_s5 + $0x1b8] sm:$0xff]  ;;  %v2005_v35 = vpack.c.bf16 %v1096_v52, %v1094_v26  ;;  %v3126_v52 = vld [vmem:[%s3623_s4] sm:$0x3f] }
  0x52   : > { %1986 = vmatpush1.bf16.msra.mxu1 %v1985_v37  ;;  %v2007_v37 = vpack.c.bf16 %v1101_v28, %v1099_v27 }
  0x53   : > { %1902 = vmatpush1.bf16.msra.mxu0 %v1901_v47  ;;  %v1923_v47 = vpack.c.bf16 %v439_v38, %v433_v36  ;;  %1988 = vmatprep.subr.bf16.mxu1 %v1987_v39  ;;  %v499_v36 = vld [vmem:[%s3621_s2 + $0x2f8] sm:$0xff]  ;;  %v1098_v38 = vld [vmem:[%s3624_s5 + $0x1a0] sm:$0xff]  ;;  %v1100_v39 = vld [vmem:[%s3624_s5 + $0x1b0] sm:$0xff] }
  0x54   : > { %1904 = vmatprep.subr.bf16.mxu0 %v1903_v51  ;;  %v1989_v51 = vpack.c.bf16 %v1080_v42, %v1078_v40  ;;  %v1943_v42 = vpack.c.bf16 %v499_v36, %v493_v34 }
  0x56   : > { %1990 = vmatpush1.bf16.msra.mxu1 %v1989_v51  ;;  %v504_v51 = vld [vmem:[%s3621_s2 + $0x320] sm:$0xff] }
  0x57   : > { %1906 = vmatpush1.bf16.msra.mxu0 %v1905_v60  ;;  %v444_v60 = vld [vmem:[%s3621_s2 + $0x140] sm:$0xff]  ;;  %1992 = vmatprep.subr.bf16.mxu1 %v1991_v53  ;;  %v517_v53 = vld [vmem:[%s3621_s2 + $0x388] sm:$0xff] }
  0x58   : > { %1908 = vmatprep.subr.bf16.mxu0 %v1907_v0  ;;  %v463_v0 = vld [vmem:[%s3621_s2 + $0x1d8] sm:$0xff]  ;;  %v1929_v6 = vpack.c.bf16 %v450_v61, %v444_v60  ;;  %v1951_v56 = vpack.c.bf16 %v523_v54, %v517_v53  ;;  %v1103_v60 = vld [vmem:[%s3624_s5 + $0x1c8] sm:$0xff] }
  0x59   : > { %v1931_v8 = vpack.c.bf16 %v463_v0, %v457_v62  ;;  %v1105_v61 = vld [vmem:[%s3624_s5 + $0x1d8] sm:$0xff]  ;;  %v1104_v0 = vld [vmem:[%s3624_s5 + $0x1d0] sm:$0xff]  ;;  %v1457_v53 = vld [vmem:[%s3626_s7 + $0x68] sm:$0xff] }
  0x5a   : > { %1994 = vmatpush1.bf16.msra.mxu1 %v1993_v63  ;;  %v2011_v62 = vpack.c.bf16 %v1105_v61, %v1103_v60  ;;  %v1102_v63 = vld [vmem:[%s3624_s5 + $0x1c0] sm:$0xff]  ;;  %v1119_v60 = vld [vmem:[%s3624_s5 + $0x248] sm:$0xff]  ;;  %v1121_v61 = vld [vmem:[%s3624_s5 + $0x258] sm:$0xff] }
  0x5b   : > { %1910 = vmatpush1.bf16.msra.mxu0 %v1909_v9  ;;  %v456_v9 = vld [vmem:[%s3621_s2 + $0x1a0] sm:$0xff]  ;;  %1996 = vmatprep.subr.bf16.mxu1 %v1995_v1  ;;  %v2013_v1 = vpack.c.bf16 %v1104_v0, %v1102_v63  ;;  %v1458_v63 = vld [vmem:[%s3626_s7 + $0x70] sm:$0xff]  ;;  %v1459_v0 = vld [vmem:[%s3626_s7 + $0x78] sm:$0xff] }
  0x5c   : > { %1912 = vmatprep.subr.bf16.mxu0 %v1911_v13  ;;  %v475_v13 = vld [vmem:[%s3621_s2 + $0x238] sm:$0xff]  ;;  %v1933_v41 = vpack.c.bf16 %v462_v10, %v456_v9 }
  0x5d   : > { %v1935_v19 = vpack.c.bf16 %v475_v13, %v469_v11  ;;  %v1113_v9 = vld [vmem:[%s3624_s5 + $0x218] sm:$0xff]  ;;  %v1444_v13 = vld [vmem:[%s3626_s7] sm:$0xff] }
  0x5e   : > { %1998 = vmatpush1.bf16.msra.mxu1 %v1997_v12 }
  0x5f   : > { %1914 = vmatpush1.bf16.msra.mxu0 %v1913_v20  ;;  %v468_v20 = vld [vmem:[%s3621_s2 + $0x200] sm:$0xff]  ;;  %2000 = vmatprep.subr.bf16.mxu1 %v1999_v14  ;;  %v1445_v14 = vld [vmem:[%s3626_s7 + $0x8] sm:$0xff] }
  0x60   : > { %1916 = vmatprep.subr.bf16.mxu0 %v1915_v22  ;;  %v481_v22 = vld [vmem:[%s3621_s2 + $0x268] sm:$0xff]  ;;  %v1937_v29 = vpack.c.bf16 %v474_v21, %v468_v20  ;;  %v2124_v17 = vpack.c.bf16 %v1445_v14, %v1444_v13  ;;  %v1448_v20 = vld [vmem:[%s3626_s7 + $0x20] sm:$0xff]  ;;  %v1124_v13 = vld [vmem:[%s3624_s5 + $0x270] sm:$0xff] }
  0x61   : > { %v1939_v30 = vpack.c.bf16 %v487_v24, %v481_v22  ;;  %v1449_v21 = vld [vmem:[%s3626_s7 + $0x28] sm:$0xff]  ;;  %v1450_v24 = vld [vmem:[%s3626_s7 + $0x30] sm:$0xff] }
  0x62   : > { %925 = vmatmul.mubr.f32.vlgmr.msra.gmra.mrb[2].mxu0 %v2631_v32  ;;  %2002 = vmatpush1.bf16.msra.mxu1 %v2001_v23  ;;  %v2130_v23 = vpack.c.bf16 %v1449_v21, %v1448_v20  ;;  %v1127_v14 = vld [vmem:[%s3624_s5 + $0x288] sm:$0xff]  ;;  %v1133_v21 = vld [vmem:[%s3624_s5 + $0x2b8] sm:$0xff] }
  0x63   : > { %1918 = vmatpush1.bf16.msra.mxu0 %v1917_v31  ;;  %1743 = vmatprep.mubr.msk.f32.mxu0 %vm785_vm3, %v2519_v46  ;;  %v451_v46 = vld [vmem:[%s3621_s2 + $0x178] sm:$0xff]  ;;  %v480_v31 = vld [vmem:[%s3621_s2 + $0x260] sm:$0xff]  ;;  %v1131_v20 = vld [vmem:[%s3624_s5 + $0x2a8] sm:$0xff] }
  0x64   : > { %1920 = vmatprep.subr.bf16.mxu0 %v1919_v33  ;;  %v1927_v59 = vpack.c.bf16 %v451_v46, %v445_v50  ;;  %v486_v33 = vld [vmem:[%s3621_s2 + $0x290] sm:$0xff]  ;;  %2004 = vmatprep.subr.bf16.mxu1 %v2003_v25  ;;  %v1451_v25 = vld [vmem:[%s3626_s7 + $0x38] sm:$0xff] }
  0x65   : > { %v1941_v40 = vpack.c.bf16 %v486_v33, %v480_v31  ;;  %v510_v46 = vld [vmem:[%s3621_s2 + $0x350] sm:$0xff]  ;;  %v2133_v28 = vpack.c.bf16 %v1451_v25, %v1450_v24  ;;  %v1453_v31 = vld [vmem:[%s3626_s7 + $0x48] sm:$0xff]  ;;  %v2039_v24 = vpack.c.bf16 %v1133_v21, %v1131_v20  ;;  %v1130_v25 = vld [vmem:[%s3624_s5 + $0x2a0] sm:$0xff] }
  0x66   : > { %2006 = vmatpush1.bf16.msra.mxu1 %v2005_v35  ;;  %v1949_v55 = vpack.c.bf16 %v510_v46, %v504_v51  ;;  %v1456_v46 = vld [vmem:[%s3626_s7 + $0x60] sm:$0xff]  ;;  %v1163_v20 = vld [vmem:[%s3624_s5 + $0x3a8] sm:$0xff]  ;;  %v1165_v21 = vld [vmem:[%s3624_s5 + $0x3b8] sm:$0xff] }
  0x67   : > { %1922 = vmatpush1.bf16.msra.mxu0 %v1921_v45  ;;  %v2009_v45 = vpack.c.bf16 %v1100_v39, %v1098_v38  ;;  %2008 = vmatprep.subr.bf16.mxu1 %v2007_v37 }
  0x68   : > { %1924 = vmatprep.subr.bf16.mxu0 %v1923_v47  ;;  %v505_v47 = vld [vmem:[%s3621_s2 + $0x328] sm:$0xff] }
  0x69   : > { %v1947_v50 = vpack.c.bf16 %v511_v48, %v505_v47  ;;  %v1112_v47 = vld [vmem:[%s3624_s5 + $0x210] sm:$0xff] }
  0x6a   : > { %2010 = vmatpush1.bf16.msra.mxu1 %v2009_v45  ;;  %v1110_v45 = vld [vmem:[%s3624_s5 + $0x200] sm:$0xff] }
  0x6b   : > { %1926 = vmatpush1.bf16.msra.mxu0 %v1925_v58  ;;  %v522_v58 = vld [vmem:[%s3621_s2 + $0x3b0] sm:$0xff]  ;;  %2012 = vmatprep.subr.bf16.mxu1 %v2011_v62  ;;  %v2142_v62 = vpack.c.bf16 %v1457_v53, %v1456_v46  ;;  %v1147_v46 = vld [vmem:[%s3624_s5 + $0x328] sm:$0xff]  ;;  %v1149_v53 = vld [vmem:[%s3624_s5 + $0x338] sm:$0xff] }
  0x6c   : > { %1928 = vmatprep.subr.bf16.mxu0 %v1927_v59  ;;  %v1953_v59 = vpack.c.bf16 %v522_v58, %v516_v57  ;;  %v1114_v58 = vld [vmem:[%s3624_s5 + $0x220] sm:$0xff] }
  0x6e   : > { %2014 = vmatpush1.bf16.msra.mxu1 %v2013_v1 }
  0x6f   : > { %1930 = vmatpush1.bf16.msra.mxu0 %v1929_v6  ;;  %v2017_v6 = vpack.c.bf16 %v1108_v5, %v1106_v4  ;;  %v1123_v4 = vld [vmem:[%s3624_s5 + $0x268] sm:$0xff]  ;;  %v1125_v5 = vld [vmem:[%s3624_s5 + $0x278] sm:$0xff] }
  0x70   : > { %1932 = vmatprep.subr.bf16.mxu0 %v1931_v8  ;;  %v1111_v8 = vld [vmem:[%s3624_s5 + $0x208] sm:$0xff] }
  0x71   : > { %v2019_v10 = vpack.c.bf16 %v1113_v9, %v1111_v8  ;;  %v2145_v8 = vpack.c.bf16 %v1459_v0, %v1458_v63 }
  0x73   : > { %1934 = vmatpush1.bf16.msra.mxu0 %v1933_v41  ;;  %v1004_v41 = vlaneseq }
  0x74   : > { %1936 = vmatprep.subr.bf16.mxu0 %v1935_v19  ;;  %v2127_v19 = vpack.c.bf16 %v1447_v18, %v1446_v15  ;;  %v1129_v15 = vld [vmem:[%s3624_s5 + $0x298] sm:$0xff] }
  0x75   : > { %v3113_v22 = vshrl.u32 %v1004_v41, 7  ;;  %v2035_v18 = vpack.c.bf16 %v1129_v15, %v1127_v14  ;;  %v1126_v41 = vld [vmem:[%s3624_s5 + $0x280] sm:$0xff]  ;;  %v1159_v14 = vld [vmem:[%s3624_s5 + $0x388] sm:$0xff]  ;;  %v1161_v15 = vld [vmem:[%s3624_s5 + $0x398] sm:$0xff] }
  0x77   : > { %1938 = vmatpush1.bf16.msra.mxu0 %v1937_v29  ;;  %v1006_v26 = vsub.s32 0, %v3113_v22  ;;  %v1010_v27 = vsub.s32 1, %v3113_v22 }
  0x78   : > { %1940 = vmatprep.subr.bf16.mxu0 %v1939_v30  ;;  %v1452_v30 = vld [vmem:[%s3626_s7 + $0x40] sm:$0xff] }
  0x79   : > { %v1007_v34 = vrot.slane %v3126_v52, %v1006_v26  ;;  %v1011_v36 = vrot.slane %v3126_v52, %v1010_v27  ;;  %v2136_v37 = vpack.c.bf16 %v1453_v31, %v1452_v30  ;;  %v1135_v30 = vld [vmem:[%s3624_s5 + $0x2c8] sm:$0xff]  ;;  %v1137_v31 = vld [vmem:[%s3624_s5 + $0x2d8] sm:$0xff] }
  0x7b   : > { %1942 = vmatpush1.bf16.msra.mxu0 %v1941_v40  ;;  %v1454_v40 = vld [vmem:[%s3626_s7 + $0x50] sm:$0xff] }
  0x7c   : > { %1944 = vmatprep.subr.bf16.mxu0 %v1943_v42  ;;  %v1455_v42 = vld [vmem:[%s3626_s7 + $0x58] sm:$0xff] }
  0x7d   : > { %v2139_v51 = vpack.c.bf16 %v1455_v42, %v1454_v40 }
  0x7f   : > { %1946 = vmatpush1.bf16.msra.mxu0 %v1945_v49  ;;  %v1115_v49 = vld [vmem:[%s3624_s5 + $0x228] sm:$0xff] }
  0x80   : > { %1948 = vmatprep.subr.bf16.mxu0 %v1947_v50  ;;  %v1117_v50 = vld [vmem:[%s3624_s5 + $0x238] sm:$0xff] }
  0x81   : > { %v2023_v57 = vpack.c.bf16 %v1117_v50, %v1115_v49  ;;  %v1142_v50 = vld [vmem:[%s3624_s5 + $0x300] sm:$0xff] }
  0x83   : > { %1950 = vmatpush1.bf16.msra.mxu0 %v1949_v55  ;;  %v2021_v55 = vpack.c.bf16 %v1112_v47, %v1110_v45  ;;  %v1143_v45 = vld [vmem:[%s3624_s5 + $0x308] sm:$0xff]  ;;  %v1145_v47 = vld [vmem:[%s3624_s5 + $0x318] sm:$0xff] }
  0x84   : > { %1952 = vmatprep.subr.bf16.mxu0 %v1951_v56  ;;  %v2051_v49 = vpack.c.bf16 %v1145_v47, %v1143_v45  ;;  %v1170_v45 = vld [vmem:[%s3624_s5 + $0x3e0] sm:$0xff]  ;;  %v1172_v47 = vld [vmem:[%s3624_s5 + $0x3f0] sm:$0xff] }
  0x87   : > { %1954 = vmatpush1.bf16.msra.mxu0 %v1953_v59  ;;  %v1116_v59 = vld [vmem:[%s3624_s5 + $0x230] sm:$0xff] }
  0x88   : > { %2123 = vmatprep.subr.bf16.mxu0 %v2295_v16  ;;  %v2025_v1 = vpack.c.bf16 %v1116_v59, %v1114_v58  ;;  %v1148_v58 = vld [vmem:[%s3624_s5 + $0x330] sm:$0xff]  ;;  %v1151_v59 = vld [vmem:[%s3624_s5 + $0x348] sm:$0xff] }
  0x8a   : > { %996 = vmatmul.mubr.f32.vlgmr.msra.gmra.mrb[4].mxu0 %v2631_v32  ;;  %v1107_v32 = vld [vmem:[%s3624_s5 + $0x1e8] sm:$0xff] }
  0x8b   : > { %v2015_v3 = vpack.c.bf16 %v1109_v2, %v1107_v32  ;;  %2125 = vmatpush1.bf16.msra.mxu0 %v2124_v17  ;;  %v2027_v32 = vpack.c.bf16 %v1121_v61, %v1119_v60  ;;  %v1118_v2 = vld [vmem:[%s3624_s5 + $0x240] sm:$0xff]  ;;  %v1153_v60 = vld [vmem:[%s3624_s5 + $0x358] sm:$0xff] }
  0x8c   : > { %2126 = vmatprep.subr.bf16.mxu0 %v2295_v16 }
  0x8d   : > { %2016 = vmatprep.subr.bf16.mxu1 %v2015_v3  ;;  %v1120_v3 = vld [vmem:[%s3624_s5 + $0x250] sm:$0xff] }
  0x8e   : > { %2018 = vmatpush1.bf16.msra.mxu1 %v2017_v6 }
  0x8f   : > { %2020 = vmatprep.subr.bf16.mxu1 %v2019_v10  ;;  %2128 = vmatpush1.bf16.msra.mxu0 %v2127_v19  ;;  %v2029_v10 = vpack.c.bf16 %v1120_v3, %v1118_v2  ;;  %v1128_v19 = vld [vmem:[%s3624_s5 + $0x290] sm:$0xff]  ;;  %v2059_v2 = vpack.c.bf16 %v1153_v60, %v1151_v59  ;;  %v1150_v3 = vld [vmem:[%s3624_s5 + $0x340] sm:$0xff] }
  0x90   : > { %2129 = vmatprep.subr.bf16.mxu0 %v2295_v16  ;;  %v1178_v60 = vld [vmem:[%s3624_s5 + $0x420] sm:$0xff] }
  0x93   : > { %2131 = vmatpush1.bf16.msra.mxu0 %v2130_v23  ;;  %v2037_v23 = vpack.c.bf16 %v1128_v19, %v1126_v41  ;;  %v1158_v41 = vld [vmem:[%s3624_s5 + $0x380] sm:$0xff]  ;;  %v1160_v19 = vld [vmem:[%s3624_s5 + $0x390] sm:$0xff] }
  0x94   : > { %2132 = vmatprep.subr.bf16.mxu0 %v2295_v16 }
  0x97   : > { %2134 = vmatpush1.bf16.msra.mxu0 %v2133_v28  ;;  %v1132_v28 = vld [vmem:[%s3624_s5 + $0x2b0] sm:$0xff] }
  0x98   : > { %2135 = vmatprep.subr.bf16.mxu0 %v2295_v16 }
  0x9b   : > { %2137 = vmatpush1.bf16.msra.mxu0 %v2136_v37  ;;  %v1136_v37 = vld [vmem:[%s3624_s5 + $0x2d0] sm:$0xff] }
  0x9c   : > { %2138 = vmatprep.subr.bf16.mxu0 %v2295_v16 }
  0x9f   : > { %2140 = vmatpush1.bf16.msra.mxu0 %v2139_v51  ;;  %v1144_v51 = vld [vmem:[%s3624_s5 + $0x310] sm:$0xff] }
  0xa0   : > { %2141 = vmatprep.subr.bf16.mxu0 %v2295_v16 }
  0xa3   : > { %2143 = vmatpush1.bf16.msra.mxu0 %v2142_v62 }
  0xa4   : > { %2144 = vmatprep.subr.bf16.mxu0 %v2295_v16 }
  0xa7   : > { %2146 = vmatpush1.bf16.msra.mxu0 %v2145_v8 }
  0xa8   : > { %2147 = vmatprep.subr.bf16.mxu0 %v2295_v16 }
  0xf3   : > { %v638_v11 = vpop.f32.mrb[0].mxu1 }
  0xf4   : > { %v640_v12 = vpop.f32.mrb[1].mxu1 }
  0xfe   : > { %v3129_v29 = vpop.f32.mrb[2].mxu1 }
  0xff   : > { %v3138_v33 = vpop.f32.mrb[3].mxu1 }
 0x107   : > { %v3203_v6 = vpop.f32.mrb[4].mxu1 }
 0x108   : > { %v3205_v9 = vpop.f32.mrb[5].mxu1 }
 0x10d   : > { %v855_v35 = vpop.f32.mrb[0].mxu0 }
 0x10e   : > { %v856_v38 = vadd.f32 %v855_v35, %v638_v11  ;;  %v857_v39 = vpop.f32.mrb[1].mxu0  ;;  %v2031_v11 = vpack.c.bf16 %v1125_v5, %v1123_v4  ;;  %v2043_v35 = vpack.c.bf16 %v1137_v31, %v1135_v30  ;;  %v1152_v4 = vld [vmem:[%s3624_s5 + $0x350] sm:$0xff]  ;;  %v1155_v5 = vld [vmem:[%s3624_s5 + $0x368] sm:$0xff]  ;;  %v1169_v31 = vld [vmem:[%s3624_s5 + $0x3d8] sm:$0xff] }
 0x10f   : > { %v858_v43 = vadd.f32 %v857_v39, %v640_v12  ;;  %v1122_v12 = vld [vmem:[%s3624_s5 + $0x260] sm:$0xff]  ;;  %v1141_v39 = vld [vmem:[%s3624_s5 + $0x2f8] sm:$0xff]  ;;  %v1167_v30 = vld [vmem:[%s3624_s5 + $0x3c8] sm:$0xff] }
 0x110   : > { %v1034_v44 = vadd.f32 %v1007_v34, %v856_v38  ;;  %v2033_v17 = vpack.c.bf16 %v1124_v13, %v1122_v12  ;;  %v2041_v34 = vpack.c.bf16 %v1132_v28, %v1130_v25  ;;  %v1139_v38 = vld [vmem:[%s3624_s5 + $0x2e8] sm:$0xff]  ;;  %v1154_v12 = vld [vmem:[%s3624_s5 + $0x360] sm:$0xff]  ;;  %v1156_v13 = vld [vmem:[%s3624_s5 + $0x370] sm:$0xff] }
 0x111   : > { %v1035_v48 = vadd.f32 %v1011_v36, %v858_v43  ;;  %v1134_v36 = vld [vmem:[%s3624_s5 + $0x2c0] sm:$0xff]  ;;  %v2047_v42 = vpack.c.bf16 %v1141_v39, %v1139_v38  ;;  %v1164_v28 = vld [vmem:[%s3624_s5 + $0x3b0] sm:$0xff]  ;;  %v1171_v39 = vld [vmem:[%s3624_s5 + $0x3e8] sm:$0xff] }
 0x112   : > { %v1040_v56 = vmax.f32 %v1034_v44, 0.0  ;;  %v2045_v40 = vpack.c.bf16 %v1136_v37, %v1134_v36  ;;  %v1138_v43 = vld [vmem:[%s3624_s5 + $0x2e0] sm:$0xff]  ;;  %v1140_v44 = vld [vmem:[%s3624_s5 + $0x2f0] sm:$0xff]  ;;  %v2075_v36 = vpack.c.bf16 %v1169_v31, %v1167_v30 }
 0x113   : > { %v1041_v54 = vmax.f32 %v1035_v48, 0.0  ;;  %v2049_v48 = vpack.c.bf16 %v1140_v44, %v1138_v43  ;;  %v1162_v25 = vld [vmem:[%s3624_s5 + $0x3a0] sm:$0xff]  ;;  %v1168_v38 = vld [vmem:[%s3624_s5 + $0x3d0] sm:$0xff] }
 0x114   : > { %v1166_v37 = vld [vmem:[%s3624_s5 + $0x3c0] sm:$0xff]  ;;  %v1196_v31 = vld [vmem:[%s3624_s5 + $0x4b0] sm:$0xff] }
 0x115   : > { %1293 = vmatprep.mubr.f32.mxu1 %v1041_v54  ;;  %v1018_v54 = vsub.s32 3, %v3113_v22  ;;  %v2077_v43 = vpack.c.bf16 %v1168_v38, %v1166_v37  ;;  %v1194_v30 = vld [vmem:[%s3624_s5 + $0x4a0] sm:$0xff] }
 0x116   : > { %1294 = vmatmul.mubr.f32.vlgmr.msra.gmra.mrb[6].mxu1 %v1040_v56  ;;  %v2055_v56 = vpack.c.bf16 %v1149_v53, %v1147_v46  ;;  %v1174_v53 = vld [vmem:[%s3624_s5 + $0x400] sm:$0xff] }
 0x117   : > { %2022 = vmatpush1.bf16.msra.mxu1 %v2021_v55  ;;  %v2053_v55 = vpack.c.bf16 %v1144_v51, %v1142_v50  ;;  %v1019_v62 = vrot.slane %v3126_v52, %v1018_v54  ;;  %v2081_v51 = vpack.c.bf16 %v1172_v47, %v1170_v45  ;;  %v1176_v54 = vld [vmem:[%s3624_s5 + $0x410] sm:$0xff]  ;;  %v1198_v38 = vld [vmem:[%s3624_s5 + $0x4c0] sm:$0xff] }
 0x118   : > { %2024 = vmatprep.subr.bf16.mxu1 %v2023_v57  ;;  %v1146_v57 = vld [vmem:[%s3624_s5 + $0x320] sm:$0xff]  ;;  %v1204_v47 = vld [vmem:[%s3624_s5 + $0x4f0] sm:$0xff] }
 0x119   : > { %v1202_v45 = vld [vmem:[%s3624_s5 + $0x4e0] sm:$0xff] }
 0x11b   : > { %2026 = vmatpush1.bf16.msra.mxu1 %v2025_v1  ;;  %v2057_v1 = vpack.c.bf16 %v1148_v58, %v1146_v57  ;;  %v2085_v58 = vpack.c.bf16 %v1176_v54, %v1174_v53  ;;  %v1206_v53 = vld [vmem:[%s3624_s5 + $0x500] sm:$0xff]  ;;  %v1208_v54 = vld [vmem:[%s3624_s5 + $0x510] sm:$0xff] }
 0x11c   : > { %2028 = vmatprep.subr.bf16.mxu1 %v2027_v32 }
 0x11f   : > { %2030 = vmatpush1.bf16.msra.mxu1 %v2029_v10 }
 0x120   : > { %2032 = vmatprep.subr.bf16.mxu1 %v2031_v11 }
 0x123   : > { %2034 = vmatpush1.bf16.msra.mxu1 %v2033_v17  ;;  %v2065_v17 = vpack.c.bf16 %v1156_v13, %v1154_v12  ;;  %v1193_v12 = vld [vmem:[%s3624_s5 + $0x498] sm:$0xff] }
 0x124   : > { %2036 = vmatprep.subr.bf16.mxu1 %v2035_v18  ;;  %v2067_v18 = vpack.c.bf16 %v1161_v15, %v1159_v14 }
 0x127   : > { %2038 = vmatpush1.bf16.msra.mxu1 %v2037_v23  ;;  %v2069_v23 = vpack.c.bf16 %v1160_v19, %v1158_v41 }
 0x128   : > { %2040 = vmatprep.subr.bf16.mxu1 %v2039_v24  ;;  %v2071_v24 = vpack.c.bf16 %v1165_v21, %v1163_v20  ;;  %v1190_v20 = vld [vmem:[%s3624_s5 + $0x480] sm:$0xff]  ;;  %v1192_v21 = vld [vmem:[%s3624_s5 + $0x490] sm:$0xff] }
 0x12b   : > { %2042 = vmatpush1.bf16.msra.mxu1 %v2041_v34  ;;  %v1014_v34 = vsub.s32 2, %v3113_v22 }
 0x12c   : > { %2044 = vmatprep.subr.bf16.mxu1 %v2043_v35  ;;  %v2073_v35 = vpack.c.bf16 %v1164_v28, %v1162_v25 }
 0x12f   : > { %2046 = vmatpush1.bf16.msra.mxu1 %v2045_v40  ;;  %v1173_v40 = vld [vmem:[%s3624_s5 + $0x3f8] sm:$0xff] }
 0x130   : > { %2048 = vmatprep.subr.bf16.mxu1 %v2047_v42  ;;  %v1015_v42 = vrot.slane %v3126_v52, %v1014_v34  ;;  %v2079_v44 = vpack.c.bf16 %v1173_v40, %v1171_v39  ;;  %v1199_v34 = vld [vmem:[%s3624_s5 + $0x4c8] sm:$0xff]  ;;  %v1200_v39 = vld [vmem:[%s3624_s5 + $0x4d0] sm:$0xff] }
 0x131   : > { %v1203_v40 = vld [vmem:[%s3624_s5 + $0x4e8] sm:$0xff] }
 0x133   : > { %2050 = vmatpush1.bf16.msra.mxu1 %v2049_v48  ;;  %v1175_v48 = vld [vmem:[%s3624_s5 + $0x408] sm:$0xff] }
 0x134   : > { %2052 = vmatprep.subr.bf16.mxu1 %v2051_v49  ;;  %v1177_v49 = vld [vmem:[%s3624_s5 + $0x418] sm:$0xff] }
 0x135   : > { %v926_v61 = vpop.f32.mrb[2].mxu0  ;;  %v2083_v46 = vpack.c.bf16 %v1177_v49, %v1175_v48  ;;  %v1207_v48 = vld [vmem:[%s3624_s5 + $0x508] sm:$0xff]  ;;  %v1209_v49 = vld [vmem:[%s3624_s5 + $0x518] sm:$0xff] }
 0x136   : > { %v927_v63 = vadd.f32 %v926_v61, %v3129_v29  ;;  %v928_v0 = vpop.f32.mrb[3].mxu0  ;;  %v1157_v29 = vld [vmem:[%s3624_s5 + $0x378] sm:$0xff]  ;;  %v1180_v61 = vld [vmem:[%s3624_s5 + $0x430] sm:$0xff] }
 0x137   : > { %2054 = vmatpush1.bf16.msra.mxu1 %v2053_v55  ;;  %v929_v32 = vadd.f32 %v928_v0, %v3138_v33  ;;  %v2061_v33 = vpack.c.bf16 %v1152_v4, %v1150_v3  ;;  %v2063_v11 = vpack.c.bf16 %v1157_v29, %v1155_v5  ;;  %v1179_v55 = vld [vmem:[%s3624_s5 + $0x428] sm:$0xff]  ;;  %v2089_v0 = vpack.c.bf16 %v1180_v61, %v1178_v60  ;;  %v1189_v4 = vld [vmem:[%s3624_s5 + $0x478] sm:$0xff]  ;;  %v1210_v60 = vld [vmem:[%s3624_s5 + $0x520] sm:$0xff] }
 0x138   : > { %2056 = vmatprep.subr.bf16.mxu1 %v2055_v56  ;;  %v1036_v50 = vadd.f32 %v1015_v42, %v927_v63  ;;  %v1181_v56 = vld [vmem:[%s3624_s5 + $0x438] sm:$0xff]  ;;  %v1187_v3 = vld [vmem:[%s3624_s5 + $0x468] sm:$0xff]  ;;  %v1026_v5 = vsub.s32 5, %v3113_v22  ;;  %v1212_v61 = vld [vmem:[%s3624_s5 + $0x530] sm:$0xff] }
 0x139   : > { %v1037_v8 = vadd.f32 %v1019_v62, %v929_v32  ;;  %v2087_v59 = vpack.c.bf16 %v1181_v56, %v1179_v55  ;;  %v1183_v62 = vld [vmem:[%s3624_s5 + $0x448] sm:$0xff]  ;;  %v1185_v63 = vld [vmem:[%s3624_s5 + $0x458] sm:$0xff]  ;;  %v1182_v32 = vld [vmem:[%s3624_s5 + $0x440] sm:$0xff] }
 0x13a   : > { %v1042_v57 = vmax.f32 %v1036_v50, 0.0  ;;  %v1027_v14 = vrot.slane %v3126_v52, %v1026_v5  ;;  %v1205_v42 = vld [vmem:[%s3624_s5 + $0x4f8] sm:$0xff]  ;;  %v2113_v50 = vpack.c.bf16 %v1204_v47, %v1202_v45  ;;  %v1211_v55 = vld [vmem:[%s3624_s5 + $0x528] sm:$0xff] }
 0x13b   : > { %2058 = vmatpush1.bf16.msra.mxu1 %v2057_v1  ;;  %v1043_v10 = vmax.f32 %v1037_v8, 0.0  ;;  %v2091_v1 = vpack.c.bf16 %v1185_v63, %v1183_v62  ;;  %v2095_v8 = vpack.c.bf16 %v1189_v4, %v1187_v3  ;;  %v1213_v56 = vld [vmem:[%s3624_s5 + $0x538] sm:$0xff]  ;;  %v2121_v62 = vpack.c.bf16 %v1212_v61, %v1210_v60  ;;  %v1214_v3 = vld [vmem:[%s3625_s6] sm:$0x3] }
 0x13c   : > { %2060 = vmatprep.subr.bf16.mxu1 %v2059_v2  ;;  %v1184_v2 = vld [vmem:[%s3624_s5 + $0x450] sm:$0xff]  ;;  %v1219_v4 = vrot.slane %v1214_v3, %v1006_v26  ;;  %v1223_v5 = vrot.slane %v1214_v3, %v1010_v27  ;;  %v1548_v26 = vld [vmem:[%s3628_s9 + $0x18] sm:$0xff] }
 0x13d   : > { %1364 = vmatprep.mubr.f32.mxu1 %v1043_v10  ;;  %v2093_v29 = vpack.c.bf16 %v1184_v2, %v1182_v32  ;;  %v1188_v10 = vld [vmem:[%s3624_s5 + $0x470] sm:$0xff] }
 0x13e   : > { %v1462_v2 = vld [vmem:[%s3626_s7 + $0x90] sm:$0xff] }
 0x13f   : > { %2062 = vmatpush1.bf16.msra.mxu1 %v2061_v33  ;;  %v1186_v33 = vld [vmem:[%s3624_s5 + $0x460] sm:$0xff] }
 0x140   : > { %2064 = vmatprep.subr.bf16.mxu1 %v2063_v11  ;;  %v1191_v11 = vld [vmem:[%s3624_s5 + $0x488] sm:$0xff] }
 0x141   : > { %v2099_v19 = vpack.c.bf16 %v1193_v12, %v1191_v11  ;;  %v1546_v11 = vld [vmem:[%s3628_s9 + $0x8] sm:$0xff] }
 0x143   : > { %2066 = vmatpush1.bf16.msra.mxu1 %v2065_v17 }
 0x144   : > { %2068 = vmatprep.subr.bf16.mxu1 %v2067_v18  ;;  %v2097_v18 = vpack.c.bf16 %v1188_v10, %v1186_v33  ;;  %v1545_v10 = vld [vmem:[%s3628_s9] sm:$0xff] }
 0x147   : > { %2070 = vmatpush1.bf16.msra.mxu1 %v2069_v23  ;;  %v1195_v23 = vld [vmem:[%s3624_s5 + $0x4a8] sm:$0xff] }
 0x148   : > { %2072 = vmatprep.subr.bf16.mxu1 %v2071_v24 }
 0x14b   : > { %2074 = vmatpush1.bf16.msra.mxu1 %v2073_v35  ;;  %v1201_v35 = vld [vmem:[%s3624_s5 + $0x4d8] sm:$0xff] }
 0x14c   : > { %2076 = vmatprep.subr.bf16.mxu1 %v2075_v36  ;;  %v2105_v36 = vpack.c.bf16 %v1196_v31, %v1194_v30  ;;  %v2107_v37 = vpack.c.bf16 %v1201_v35, %v1199_v34  ;;  %v1557_v30 = vld [vmem:[%s3628_s9 + $0x60] sm:$0xff]  ;;  %v1558_v31 = vld [vmem:[%s3628_s9 + $0x68] sm:$0xff]  ;;  %v1559_v35 = vld [vmem:[%s3628_s9 + $0x70] sm:$0xff] }
 0x14d   : > { %v2169_v34 = vpack.c.bf16 %v1558_v31, %v1557_v30 }
 0x14f   : > { %2078 = vmatpush1.bf16.msra.mxu1 %v2077_v43  ;;  %v2109_v43 = vpack.c.bf16 %v1200_v39, %v1198_v38  ;;  %v1745_v38 = vld [vmem:[%s3627_s8] ss:$0 sm:$0xff] }
 0x150   : > { %2080 = vmatprep.subr.bf16.mxu1 %v2079_v44  ;;  %v2111_v44 = vpack.c.bf16 %v1205_v42, %v1203_v40 }
 0x153   : > { %2082 = vmatpush1.bf16.msra.mxu1 %v2081_v51  ;;  %v1022_v51 = vsub.s32 4, %v3113_v22  ;;  %v1547_v22 = vld [vmem:[%s3628_s9 + $0x10] sm:$0xff] }
 0x154   : > { %2084 = vmatprep.subr.bf16.mxu1 %v2083_v46  ;;  %v2115_v46 = vpack.c.bf16 %v1209_v49, %v1207_v48  ;;  %v2154_v27 = vpack.c.bf16 %v1548_v26, %v1547_v22 }
 0x156   : > { %1365 = vmatmul.mubr.f32.vlgmr.msra.gmra.mrb[6].mxu1 %v1042_v57  ;;  %v2117_v57 = vpack.c.bf16 %v1208_v54, %v1206_v53 }
 0x157   : > { %2086 = vmatpush1.bf16.msra.mxu1 %v2085_v58  ;;  %v1023_v58 = vrot.slane %v3126_v52, %v1022_v51  ;;  %v1460_v52 = vld [vmem:[%s3626_s7 + $0x80] sm:$0xff] }
 0x158   : > { %2088 = vmatprep.subr.bf16.mxu1 %v2087_v59  ;;  %v2119_v59 = vpack.c.bf16 %v1213_v56, %v1211_v55 }
 0x15b   : > { %2090 = vmatpush1.bf16.msra.mxu1 %v2089_v0 }
 0x15c   : > { %2092 = vmatprep.subr.bf16.mxu1 %v2091_v1  ;;  %v1461_v1 = vld [vmem:[%s3626_s7 + $0x88] sm:$0xff] }
 0x15d   : > { %v997_v13 = vpop.f32.mrb[4].mxu0  ;;  %v2148_v32 = vpack.c.bf16 %v1461_v1, %v1460_v52 }
 0x15e   : > { %v998_v15 = vadd.f32 %v997_v13, %v3203_v6  ;;  %v999_v17 = vpop.f32.mrb[5].mxu0  ;;  %v1197_v6 = vld [vmem:[%s3624_s5 + $0x4b8] sm:$0xff] }
 0x15f   : > { %2094 = vmatpush1.bf16.msra.mxu1 %v2093_v29  ;;  %v1000_v41 = vadd.f32 %v999_v17, %v3205_v9  ;;  %v2101_v9 = vpack.c.bf16 %v1192_v21, %v1190_v20  ;;  %v2103_v28 = vpack.c.bf16 %v1197_v6, %v1195_v23  ;;  %2149 = vmatpush1.bf16.msra.mxu0 %v2148_v32  ;;  %v1549_v17 = vld [vmem:[%s3628_s9 + $0x20] sm:$0xff]  ;;  %v1552_v20 = vld [vmem:[%s3628_s9 + $0x38] sm:$0xff]  ;;  %v1554_v6 = vld [vmem:[%s3628_s9 + $0x48] sm:$0xff] }
 0x160   : > { %2096 = vmatprep.subr.bf16.mxu1 %v2095_v8  ;;  %v1038_v63 = vadd.f32 %v1023_v58, %v998_v15  ;;  %1510 = vmatprep.subr.mxu0 %v2293_v7  ;;  %v1553_v23 = vld [vmem:[%s3628_s9 + $0x40] sm:$0xff] }
 0x161   : > { %v1039_v24 = vadd.f32 %v1027_v14, %v1000_v41  ;;  %v2151_v14 = vpack.c.bf16 %v1546_v11, %v1545_v10 }
 0x162   : > { %v1044_v0 = vmax.f32 %v1038_v63, 0.0 }
 0x163   : > { %2098 = vmatpush1.bf16.msra.mxu1 %v2097_v18  ;;  %v1045_v25 = vmax.f32 %v1039_v24, 0.0  ;;  %1511 = vmatpush1.msra.mxu0 %v1462_v2  ;;  %v1550_v18 = vld [vmem:[%s3628_s9 + $0x28] sm:$0xff]  ;;  %v2163_v24 = vpack.c.bf16 %v1554_v6, %v1553_v23 }
 0x164   : > { %2100 = vmatprep.subr.bf16.mxu1 %v2099_v19  ;;  %2150 = vmatprep.subr.bf16.mxu0 %v2295_v16  ;;  %v2157_v41 = vpack.c.bf16 %v1550_v18, %v1549_v17  ;;  %v1551_v19 = vld [vmem:[%s3628_s9 + $0x30] sm:$0xff] }
 0x165   : > { %1744 = vmatprep.mubr.msk.f32.mxu1 %vm785_vm3, %v1045_v25  ;;  %v2160_v21 = vpack.c.bf16 %v1552_v20, %v1551_v19  ;;  %v1556_v25 = vld [vmem:[%s3628_s9 + $0x58] sm:$0xff] }
 0x167   : > { %2102 = vmatpush1.bf16.msra.mxu1 %v2101_v9  ;;  %v1555_v9 = vld [vmem:[%s3628_s9 + $0x50] sm:$0xff] }
 0x168   : > { %2104 = vmatprep.subr.bf16.mxu1 %v2103_v28  ;;  %v2166_v28 = vpack.c.bf16 %v1556_v25, %v1555_v9 }
 0x16b   : > { %2106 = vmatpush1.bf16.msra.mxu1 %v2105_v36  ;;  %v1560_v36 = vld [vmem:[%s3628_s9 + $0x78] sm:$0xff] }
 0x16c   : > { %2108 = vmatprep.subr.bf16.mxu1 %v2107_v37  ;;  %v2172_v37 = vpack.c.bf16 %v1560_v36, %v1559_v35 }
 0x16f   : > { %2110 = vmatpush1.bf16.msra.mxu1 %v2109_v43  ;;  %v1747_v43 = vld [vmem:[%s3629_s10] ss:$0 sm:$0xff] }
 0x170   : > { %2112 = vmatprep.subr.bf16.mxu1 %v2111_v44 }
 0x173   : > { %2114 = vmatpush1.bf16.msra.mxu1 %v2113_v50 }
 0x174   : > { %2116 = vmatprep.subr.bf16.mxu1 %v2115_v46 }
 0x177   : > { %2118 = vmatpush1.bf16.msra.mxu1 %v2117_v57 }
 0x178   : > { %2120 = vmatprep.subr.bf16.mxu1 %v2119_v59 }
 0x17b   : > { %2122 = vmatpush1.bf16.msra.mxu1 %v2121_v62 }
 0x17e   : > { %1436 = vmatmul.mubr.f32.vlgmr.msra.gmra.mrb[6].mxu1 %v1044_v0 }
 0x251   : > { %v1437_v29 = vpop.f32.mrb[6].mxu1 }
 0x252   : > { %v2180_v8 = vadd.f32 %v1437_v29, %v1219_v4  ;;  %v1439_v33 = vpop.f32.mrb[7].mxu1 }
 0x253   : > { %v2181_v12 = vadd.f32 %v1439_v33, %v1223_v5 }
 0x254   : > { %v1442_v15 = vmax.f32 %v2180_v8, 0.0 }
 0x255   : > { %v1443_v13 = vmax.f32 %v2181_v12, 0.0 }
 0x257   : > { %1746 = vmatprep.mubr.msk.f32.mxu0 %vm1470_vm5, %v1443_v13 }
 0x258   : > { %1539 = vmatmul.mubr.f32.vlgmr.msra.gmra.mrb[6].mxu0 %v1442_v15 }
 0x259   : > { %2152 = vmatpush3.bf16.msra.mxu0 %v2151_v14  ;;  %1802 = vmatprep.mubr.msk.f32.mxu0 %vm2296_vm6, %v2293_v7 }
 0x25a   : > { %2153 = vmatprep.subr.bf16.mxu0 %v2295_v16 }
 0x25d   : > { %2155 = vmatpush3.bf16.msra.mxu0 %v2154_v27 }
 0x25e   : > { %2156 = vmatprep.subr.bf16.mxu0 %v2295_v16 }
 0x261   : > { %2158 = vmatpush3.bf16.msra.mxu0 %v2157_v41 }
 0x262   : > { %2159 = vmatprep.subr.bf16.mxu0 %v2295_v16 }
 0x265   : > { %2161 = vmatpush3.bf16.msra.mxu0 %v2160_v21 }
 0x266   : > { %2162 = vmatprep.subr.bf16.mxu0 %v2295_v16 }
 0x269   : > { %2164 = vmatpush3.bf16.msra.mxu0 %v2163_v24 }
 0x26a   : > { %2165 = vmatprep.subr.bf16.mxu0 %v2295_v16 }
 0x26d   : > { %2167 = vmatpush3.bf16.msra.mxu0 %v2166_v28 }
 0x26e   : > { %2168 = vmatprep.subr.bf16.mxu0 %v2295_v16 }
 0x271   : > { %2170 = vmatpush3.bf16.msra.mxu0 %v2169_v34 }
 0x272   : > { %2171 = vmatprep.subr.bf16.mxu0 %v2295_v16 }
 0x275   : > { %2173 = vmatpush3.bf16.msra.mxu0 %v2172_v37 }
 0x32b   : > { %v1540_v39 = vpop.f32.mrb[6].mxu0 }
 0x32c   : > { %v1541_v16 = vadd.f32 %v1745_v38, %v1540_v39  ;;  %v1542_v40 = vpop.f32.mrb[7].mxu0 }
 0x32e   : > { %v1544_v42 = vmax.f32 %v1541_v16, 0.0 }
 0x330   : > { %1803 = vmatmul.mubr.f32.vlgmr.msra.gmra.mrb[8].mxu0 %v1544_v42 }
 0x403   : > { %v1634_v7 = vpop.f32.mrb[8].mxu0 }
 0x404   : > { %v1635_v44 = vadd.f32 %v1747_v43, %v1634_v7  ;;  %v1804_v45 = vpop.f32.mrb[9].mxu0 }
 0x406   : > { %1638 = vst [vmem:[%s392_s14] sm:$0xff] %v1635_v44 }
 0x407   : > { %2242 = shalt.err (!%p2239_p3)
}
 0x408   : > { %s2243_s24 = scalar_lea.hbm %s3577_s22, 128  ;;  %s2247_s13 = scalar_lea.hbm %s3630_s11, 256 }
 0x409   : > { %p2244_p4 = scmp.ne.s32.totalorder %s3577_s22, %s2243_s24  ;;  %p2248_p9 = scmp.lt.u32.totalorder %s3577_s22, %s3630_s11 }
 0x40a   : > { %p2249_p10 = scmp.lt.u32.totalorder %s2247_s13, %s2243_s24  ;;  %p2251_p12 = scmp.lt.u32.totalorder %s2243_s24, %s3577_s22 }
 0x40b   : > { %p2245_p7 = pnand %p2244_p4, %p2396_p5 }
 0x40c   : > { %p2250_p11 = por %p2249_p10, %p2248_p9 }
 0x40d   : > { %p2246_p8 = pneg %p2245_p7 }
 0x40e   : > { %p2252_p13 = por %p2251_p12, %p2250_p11 }
 0x410   : > { %p2253_p0 = pnand %p2252_p13, %p2246_p8 }
 0x412   : > { %2256 = shalt.err (!%p2253_p0)
}
 0x413   : > { %2186 = dma.vmem_to_hbm [thread:$0]  (%p2396_p5), %s3579_s15, 128, %s3577_s22, %s1640_s25  }
 0x414 PF: > { %p2192_p1 = scmp.ge.s32.totalorder %s2291_s20, 2  ;;  %s1665_s12 = sand.u32 1, %s2279_s17  }
 0x415   : > { %s1666_s26 = scalar_lea.sflag [#allocation3], %s1665_s12 }
 0x416   : > { %p2189_p2 = pnand %p2192_p1, %p2400_p6 }
 0x418   : > { %2274 = dma.done.wait (!%p2189_p2), %s1666_s26, 128  }
 0x419   : > { %2276 = vsyncadd (!%p2189_p2), %s1666_s26, 4294967168  ;;  %s3641_s20 = sld [smem:[#allocation6_spill]]  ;;  %s3642_s21 = sld [smem:[#allocation5_spill]] }
 0x41a   : > { %s3643_s19 = sld [smem:[#allocation7_spill]]  ;;  %s3644_s17 = smov %s2283_s18 }
 0x41f   : > { %p21_p3 = scmp.ge.s32.totalorder %s3641_s20, 4   ;;  %s3645_s18 = smov %s3642_s21 }
 0x421   :  { %23 = sbr.rel (!%p21_p3) target bundleno = 3 (0x3), region = 102 }
 0x428   :  { %1671 = vsyncpa [#allocation3], 1 }
 0x429   :  { %1673 = vsyncpa [#allocation3 + $0x1], 1 }

</bundles_post_ra>
